<compile_context>
chip_gen: v5e
topology: v5e:2x2
jax: 0.10.0
libtpu: 0.0.40
codegen_flags: <defaults>
</compile_context>

<pallas_src>
import functools

import jax
import jax.numpy as jnp
from jax.experimental import pallas as pl
from jax.experimental.pallas import tpu as pltpu


def _rdblock_kernel(x_ref, wa_ref, w2o_ref, b1_ref, b2_ref, masks_ref,
                    a1_ref, a2_ref, o_ref, pad_ref, mcol_ref,
                    *, C, H, W, OFF):
    HW = H * W
    Lp = pad_ref.shape[1]

    # Zero only the halo strips (interior is fully overwritten below; the
    # strips are never written).  Done every step so the kernel stays correct
    # when the batch axis is sharded across TensorCores.
    pad_ref[:, 0:OFF] = jnp.zeros((C, OFF), jnp.float32)
    pad_ref[:, OFF + HW:Lp] = jnp.zeros((C, Lp - OFF - HW), jnp.float32)

    left_ok = masks_ref[0:1, :]     # 0 where w == 0     (tap reads w-1)
    right_ok = masks_ref[1:2, :]    # 0 where w == W-1   (tap reads w+1)

    def build_im2col():
        # Pack the 9 shifted taps of pad_ref into mcol_ref (bf16).  Destination
        # stores are sublane/lane aligned (row offsets are multiples of C>=8,
        # full 256-lane rows); the shifted source reads are inherent to the
        # conv.  bf16 halves the vst work vs. an f32 im2col.
        for kh in range(3):
            for kw in range(3):
                t = kh * 3 + kw
                s = OFF + (kh - 1) * W + (kw - 1)
                slab = pad_ref[:, s:s + HW]                      # (C, HW) f32
                if kw == 0:
                    slab = slab * left_ok
                elif kw == 2:
                    slab = slab * right_ok
                mcol_ref[t * C:(t + 1) * C, :] = slab.astype(jnp.bfloat16)

    # ---- fused first matmul: conv1 pre-activation + conv2's x-term --------
    pad_ref[:, OFF:OFF + HW] = x_ref[0]          # aligned interior store
    build_im2col()
    ya = jnp.dot(wa_ref[...], mcol_ref[...],
                 preferred_element_type=jnp.float32)             # (2C, HW)

    a1 = a1_ref[0, 0]
    y1 = ya[0:C, :] + b1_ref[...]
    mid = jnp.where(y1 > 0, y1, a1 * y1)                          # (C, HW)
    y2x = ya[C:2 * C, :]                                          # conv2 x-term

    # ---- second matmul: conv2 over the mid half only (K = 9C) -------------
    pad_ref[:, OFF:OFF + HW] = mid               # reuse the padded scratch
    build_im2col()
    y2 = jnp.dot(w2o_ref[...], mcol_ref[...],
                 preferred_element_type=jnp.float32) + y2x + b2_ref[...]

    # ---- residual add + PReLU ----------------------------------------------
    y2 = y2 + x_ref[0]
    a2 = a2_ref[0, 0]
    o_ref[0] = jnp.where(y2 > 0, y2, a2 * y2).astype(o_ref.dtype)


def _round_up(x, m):
    return ((x + m - 1) // m) * m


def rdblock_pallas(x, w1, b1, a1, w2, b2, a2):
    """RDBlock forward (matches the PyTorch RDBlock in SDAB_4).

    x:  (N, C, H, W) f32
    w1: (3, 3, C, C)  HWIO,  b1: (C,),  a1: () PReLU slope
    w2: (3, 3, 2C, C) HWIO,  b2: (C,),  a2: () PReLU slope
    """
    N, C, H, W = x.shape
    HW = H * W

    OFF = _round_up(W + 1, 128)                    # interior lane offset (aligned)
    Lp = _round_up(OFF + HW + W + 1, 128)          # padded flattened row length

    # Rearrange HWIO weights to the im2col layout: [co, (kh*3+kw)*Cin + ci].
    def to_im2col(w):
        cin = w.shape[2]
        return jnp.transpose(w, (3, 0, 1, 2)).reshape(C, 9 * cin)

    w1_all = to_im2col(w1)                                     # (C, 9C)
    w2x_all = to_im2col(w2[:, :, :C, :])                       # x half of concat
    w2o_all = to_im2col(w2[:, :, C:, :])                       # mid half of concat

    # Fused LHS: rows [0,C) -> conv1, rows [C,2C) -> conv2's x contribution.
    wa = jnp.concatenate([w1_all, w2x_all], axis=0).astype(jnp.bfloat16)   # (2C, 9C)
    w2o = w2o_all.astype(jnp.bfloat16)                                     # (C, 9C)

    b1_col = b1.reshape(C, 1).astype(jnp.float32)
    b2_col = b2.reshape(C, 1).astype(jnp.float32)
    a1_s = jnp.asarray(a1, jnp.float32).reshape(1, 1)
    a2_s = jnp.asarray(a2, jnp.float32).reshape(1, 1)

    # Column-edge validity masks (built once on host, 2*HW floats).
    wcol = jnp.arange(HW, dtype=jnp.int32) % W
    masks = jnp.stack([(wcol != 0), (wcol != W - 1)]).astype(jnp.float32)  # (2, HW)

    x2 = x.reshape(N, C, HW).astype(jnp.float32)               # free (row-major) view

    kernel = functools.partial(_rdblock_kernel, C=C, H=H, W=W, OFF=OFF)
    smem_spec = pl.BlockSpec(memory_space=pltpu.MemorySpace.SMEM)

    out2 = pl.pallas_call(
        kernel,
        out_shape=jax.ShapeDtypeStruct((N, C, HW), jnp.float32),
        grid=(N,),
        in_specs=[
            pl.BlockSpec((1, C, HW), lambda n: (n, 0, 0)),     # x (lane-dense)
            pl.BlockSpec((2 * C, 9 * C), lambda n: (0, 0)),    # fused [w1; w2_x]
            pl.BlockSpec((C, 9 * C), lambda n: (0, 0)),        # w2 mid half
            pl.BlockSpec((C, 1), lambda n: (0, 0)),            # b1
            pl.BlockSpec((C, 1), lambda n: (0, 0)),            # b2
            pl.BlockSpec((2, HW), lambda n: (0, 0)),           # column-edge masks
            smem_spec,                                         # a1 (PReLU slope)
            smem_spec,                                         # a2 (PReLU slope)
        ],
        out_specs=pl.BlockSpec((1, C, HW), lambda n: (n, 0, 0)),
        scratch_shapes=[
            pltpu.VMEM((C, Lp), jnp.float32),                  # row-padded slab (reused)
            pltpu.VMEM((9 * C, HW), jnp.bfloat16),             # im2col matrix (bf16)
        ],
        compiler_params=pltpu.CompilerParams(
            dimension_semantics=("parallel",),
        ),
    )(x2, wa, w2o, b1_col, b2_col, masks, a1_s, a2_s)

    return out2.reshape(N, C, H, W)


def _reference(x, w1, b1, a1, w2, b2, a2):
    """Pure-JAX reference matching the PyTorch RDBlock forward (NCHW)."""
    def conv(v, w, b):
        y = jax.lax.conv_general_dilated(
            v, w, window_strides=(1, 1), padding="SAME",
            dimension_numbers=("NCHW", "HWIO", "NCHW"),
            precision=jax.lax.Precision.HIGHEST)
        return y + b.reshape(1, -1, 1, 1)

    def prelu(v, a):
        return jnp.where(v > 0, v, a * v)

    out = prelu(conv(x, w1, b1), a1)
    out = conv(jnp.concatenate([x, out], axis=1), w2, b2)
    out = out + x
    return prelu(out, a2)


if __name__ == "__main__":
    key = jax.random.PRNGKey(0)
    N, C, H, W = 2, 32, 16, 16      # inplanes = 32, as used by SDAB_4.share_weight

    ks = jax.random.split(key, 5)
    x = jax.random.normal(ks[0], (N, C, H, W), jnp.float32)
    w1 = jax.random.normal(ks[1], (3, 3, C, C), jnp.float32) * 0.03
    b1 = jax.random.normal(ks[2], (C,), jnp.float32) * 0.1
    w2 = jax.random.normal(ks[3], (3, 3, 2 * C, C), jnp.float32) * 0.02
    b2 = jax.random.normal(ks[4], (C,), jnp.float32) * 0.1
    a1 = jnp.float32(0.25)          # nn.PReLU() default single slope
    a2 = jnp.float32(0.25)

    out = jax.block_until_ready(jax.jit(rdblock_pallas)(x, w1, b1, a1, w2, b2, a2))
    ref = jax.block_until_ready(_reference(x, w1, b1, a1, w2, b2, a2))

    assert out.shape == (N, C, H, W)
    err = jnp.max(jnp.abs(out - ref))
    # Tolerance covers the deliberate bf16 operand feed on the K=288
    # contractions (same rounding the default-precision MXU pass applied
    # before); genuine indexing/layout bugs produce O(0.5) errors.
    assert jnp.allclose(out, ref, atol=2e-2, rtol=2e-2), f"max abs err {err}"
    print("KERNEL_OK")
</pallas_src>

<mosaic_0001>
module attributes {stable_mosaic.version = 11 : i64} {
  func.func @_rdblock_kernel(%arg0: i32, %arg1: memref<1x32x256xf32, #tpu.memory_space<vmem>>, %arg2: memref<64x288xbf16, #tpu.memory_space<vmem>>, %arg3: memref<32x288xbf16, #tpu.memory_space<vmem>>, %arg4: memref<32x1xf32, #tpu.memory_space<vmem>>, %arg5: memref<32x1xf32, #tpu.memory_space<vmem>>, %arg6: memref<2x256xf32, #tpu.memory_space<vmem>>, %arg7: memref<1x1xf32, #tpu.memory_space<smem>>, %arg8: memref<1x1xf32, #tpu.memory_space<smem>>, %arg9: memref<1x32x256xf32, #tpu.memory_space<vmem>>, %arg10: memref<32x512xf32, #tpu.memory_space<vmem>>, %arg11: memref<288x256xbf16, #tpu.memory_space<vmem>>) attributes {dimension_semantics = [#tpu.dimension_semantics<parallel>], iteration_bounds = array<i64: 2>, scalar_prefetch = 0 : i64, scratch_operands = 2 : i64, tpu.core_type = #tpu.core_type<tc>, window_params = [{transform_indices = @transform_0, window_bounds = array<i64: 1, 32, 256>}, {pipeline_mode = #tpu.pipeline_mode<synchronous>, transform_indices = @transform_1, window_bounds = array<i64: 64, 288>}, {pipeline_mode = #tpu.pipeline_mode<synchronous>, transform_indices = @transform_2, window_bounds = array<i64: 32, 288>}, {pipeline_mode = #tpu.pipeline_mode<synchronous>, transform_indices = @transform_3, window_bounds = array<i64: 32, 1>}, {pipeline_mode = #tpu.pipeline_mode<synchronous>, transform_indices = @transform_4, window_bounds = array<i64: 32, 1>}, {pipeline_mode = #tpu.pipeline_mode<synchronous>, transform_indices = @transform_5, window_bounds = array<i64: 2, 256>}, {transform_indices = @transform_6, window_bounds = array<i64: 1, 1>}, {transform_indices = @transform_7, window_bounds = array<i64: 1, 1>}, {transform_indices = @transform_8, window_bounds = array<i64: 1, 32, 256>}]} {
    %cst = arith.constant 0.000000e+00 : f32
    %0 = vector.broadcast %cst : f32 to vector<32x128xf32>
    %c0 = arith.constant 0 : index
    %c0_0 = arith.constant 0 : index
    %1 = vector.load %arg10[%c0, %c0_0] : memref<32x512xf32, #tpu.memory_space<vmem>>, vector<32x128xf32>
    tpu.vector_store %arg10[%c0, %c0_0], %0 {strides = array<i32>} : memref<32x512xf32, #tpu.memory_space<vmem>>, vector<32x128xf32>,
    %cst_1 = arith.constant 0.000000e+00 : f32
    %2 = vector.broadcast %cst_1 : f32 to vector<32x128xf32>
    %c0_2 = arith.constant 0 : index
    %c384 = arith.constant 384 : index
    %3 = vector.load %arg10[%c0_2, %c384] : memref<32x512xf32, #tpu.memory_space<vmem>>, vector<32x128xf32>
    tpu.vector_store %arg10[%c0_2, %c384], %2 {strides = array<i32>} : memref<32x512xf32, #tpu.memory_space<vmem>>, vector<32x128xf32>,
    %c0_3 = arith.constant 0 : index
    %c0_4 = arith.constant 0 : index
    %4 = vector.load %arg6[%c0_3, %c0_4] : memref<2x256xf32, #tpu.memory_space<vmem>>, vector<1x256xf32>
    %c1 = arith.constant 1 : index
    %c0_5 = arith.constant 0 : index
    %5 = vector.load %arg6[%c1, %c0_5] : memref<2x256xf32, #tpu.memory_space<vmem>>, vector<1x256xf32>
    %c0_6 = arith.constant 0 : index
    %c0_7 = arith.constant 0 : index
    %c0_8 = arith.constant 0 : index
    %6 = vector.load %arg1[%c0_6, %c0_7, %c0_8] : memref<1x32x256xf32, #tpu.memory_space<vmem>>, vector<1x32x256xf32>
    %7 = vector.shape_cast %6 : vector<1x32x256xf32> to vector<32x256xf32>
    %c0_9 = arith.constant 0 : index
    %c128 = arith.constant 128 : index
    %8 = vector.load %arg10[%c0_9, %c128] : memref<32x512xf32, #tpu.memory_space<vmem>>, vector<32x256xf32>
    tpu.vector_store %arg10[%c0_9, %c128], %7 {strides = array<i32>} : memref<32x512xf32, #tpu.memory_space<vmem>>, vector<32x256xf32>,
    %c0_10 = arith.constant 0 : index
    %c111 = arith.constant 111 : index
    %9 = vector.load %arg10[%c0_10, %c111] : memref<32x512xf32, #tpu.memory_space<vmem>>, vector<32x256xf32>
    %10 = vector.broadcast %4 : vector<1x256xf32> to vector<32x256xf32>
    %11 = arith.mulf %9, %10 : vector<32x256xf32>
    %12 = arith.truncf %11 : vector<32x256xf32> to vector<32x256xbf16>
    %c0_11 = arith.constant 0 : index
    %c0_12 = arith.constant 0 : index
    %13 = vector.load %arg11[%c0_11, %c0_12] : memref<288x256xbf16, #tpu.memory_space<vmem>>, vector<32x256xbf16>
    tpu.vector_store %arg11[%c0_11, %c0_12], %12 {strides = array<i32>} : memref<288x256xbf16, #tpu.memory_space<vmem>>, vector<32x256xbf16>,
    %c0_13 = arith.constant 0 : index
    %c112 = arith.constant 112 : index
    %14 = vector.load %arg10[%c0_13, %c112] : memref<32x512xf32, #tpu.memory_space<vmem>>, vector<32x256xf32>
    %15 = arith.truncf %14 : vector<32x256xf32> to vector<32x256xbf16>
    %c32 = arith.constant 32 : index
    %c0_14 = arith.constant 0 : index
    %16 = vector.load %arg11[%c32, %c0_14] : memref<288x256xbf16, #tpu.memory_space<vmem>>, vector<32x256xbf16>
    tpu.vector_store %arg11[%c32, %c0_14], %15 {strides = array<i32>} : memref<288x256xbf16, #tpu.memory_space<vmem>>, vector<32x256xbf16>,
    %c0_15 = arith.constant 0 : index
    %c113 = arith.constant 113 : index
    %17 = vector.load %arg10[%c0_15, %c113] : memref<32x512xf32, #tpu.memory_space<vmem>>, vector<32x256xf32>
    %18 = vector.broadcast %5 : vector<1x256xf32> to vector<32x256xf32>
    %19 = arith.mulf %17, %18 : vector<32x256xf32>
    %20 = arith.truncf %19 : vector<32x256xf32> to vector<32x256xbf16>
    %c64 = arith.constant 64 : index
    %c0_16 = arith.constant 0 : index
    %21 = vector.load %arg11[%c64, %c0_16] : memref<288x256xbf16, #tpu.memory_space<vmem>>, vector<32x256xbf16>
    tpu.vector_store %arg11[%c64, %c0_16], %20 {strides = array<i32>} : memref<288x256xbf16, #tpu.memory_space<vmem>>, vector<32x256xbf16>,
    %c0_17 = arith.constant 0 : index
    %c127 = arith.constant 127 : index
    %22 = vector.load %arg10[%c0_17, %c127] : memref<32x512xf32, #tpu.memory_space<vmem>>, vector<32x256xf32>
    %23 = vector.broadcast %4 : vector<1x256xf32> to vector<32x256xf32>
    %24 = arith.mulf %22, %23 : vector<32x256xf32>
    %25 = arith.truncf %24 : vector<32x256xf32> to vector<32x256xbf16>
    %c96 = arith.constant 96 : index
    %c0_18 = arith.constant 0 : index
    %26 = vector.load %arg11[%c96, %c0_18] : memref<288x256xbf16, #tpu.memory_space<vmem>>, vector<32x256xbf16>
    tpu.vector_store %arg11[%c96, %c0_18], %25 {strides = array<i32>} : memref<288x256xbf16, #tpu.memory_space<vmem>>, vector<32x256xbf16>,
    %c0_19 = arith.constant 0 : index
    %c128_20 = arith.constant 128 : index
    %27 = vector.load %arg10[%c0_19, %c128_20] : memref<32x512xf32, #tpu.memory_space<vmem>>, vector<32x256xf32>
    %28 = arith.truncf %27 : vector<32x256xf32> to vector<32x256xbf16>
    %c128_21 = arith.constant 128 : index
    %c0_22 = arith.constant 0 : index
    %29 = vector.load %arg11[%c128_21, %c0_22] : memref<288x256xbf16, #tpu.memory_space<vmem>>, vector<32x256xbf16>
    tpu.vector_store %arg11[%c128_21, %c0_22], %28 {strides = array<i32>} : memref<288x256xbf16, #tpu.memory_space<vmem>>, vector<32x256xbf16>,
    %c0_23 = arith.constant 0 : index
    %c129 = arith.constant 129 : index
    %30 = vector.load %arg10[%c0_23, %c129] : memref<32x512xf32, #tpu.memory_space<vmem>>, vector<32x256xf32>
    %31 = vector.broadcast %5 : vector<1x256xf32> to vector<32x256xf32>
    %32 = arith.mulf %30, %31 : vector<32x256xf32>
    %33 = arith.truncf %32 : vector<32x256xf32> to vector<32x256xbf16>
    %c160 = arith.constant 160 : index
    %c0_24 = arith.constant 0 : index
    %34 = vector.load %arg11[%c160, %c0_24] : memref<288x256xbf16, #tpu.memory_space<vmem>>, vector<32x256xbf16>
    tpu.vector_store %arg11[%c160, %c0_24], %33 {strides = array<i32>} : memref<288x256xbf16, #tpu.memory_space<vmem>>, vector<32x256xbf16>,
    %c0_25 = arith.constant 0 : index
    %c143 = arith.constant 143 : index
    %35 = vector.load %arg10[%c0_25, %c143] : memref<32x512xf32, #tpu.memory_space<vmem>>, vector<32x256xf32>
    %36 = vector.broadcast %4 : vector<1x256xf32> to vector<32x256xf32>
    %37 = arith.mulf %35, %36 : vector<32x256xf32>
    %38 = arith.truncf %37 : vector<32x256xf32> to vector<32x256xbf16>
    %c192 = arith.constant 192 : index
    %c0_26 = arith.constant 0 : index
    %39 = vector.load %arg11[%c192, %c0_26] : memref<288x256xbf16, #tpu.memory_space<vmem>>, vector<32x256xbf16>
    tpu.vector_store %arg11[%c192, %c0_26], %38 {strides = array<i32>} : memref<288x256xbf16, #tpu.memory_space<vmem>>, vector<32x256xbf16>,
    %c0_27 = arith.constant 0 : index
    %c144 = arith.constant 144 : index
    %40 = vector.load %arg10[%c0_27, %c144] : memref<32x512xf32, #tpu.memory_space<vmem>>, vector<32x256xf32>
    %41 = arith.truncf %40 : vector<32x256xf32> to vector<32x256xbf16>
    %c224 = arith.constant 224 : index
    %c0_28 = arith.constant 0 : index
    %42 = vector.load %arg11[%c224, %c0_28] : memref<288x256xbf16, #tpu.memory_space<vmem>>, vector<32x256xbf16>
    tpu.vector_store %arg11[%c224, %c0_28], %41 {strides = array<i32>} : memref<288x256xbf16, #tpu.memory_space<vmem>>, vector<32x256xbf16>,
    %c0_29 = arith.constant 0 : index
    %c145 = arith.constant 145 : index
    %43 = vector.load %arg10[%c0_29, %c145] : memref<32x512xf32, #tpu.memory_space<vmem>>, vector<32x256xf32>
    %44 = vector.broadcast %5 : vector<1x256xf32> to vector<32x256xf32>
    %45 = arith.mulf %43, %44 : vector<32x256xf32>
    %46 = arith.truncf %45 : vector<32x256xf32> to vector<32x256xbf16>
    %c256 = arith.constant 256 : index
    %c0_30 = arith.constant 0 : index
    %47 = vector.load %arg11[%c256, %c0_30] : memref<288x256xbf16, #tpu.memory_space<vmem>>, vector<32x256xbf16>
    tpu.vector_store %arg11[%c256, %c0_30], %46 {strides = array<i32>} : memref<288x256xbf16, #tpu.memory_space<vmem>>, vector<32x256xbf16>,
    %c0_31 = arith.constant 0 : index
    %c0_32 = arith.constant 0 : index
    %48 = vector.load %arg2[%c0_31, %c0_32] : memref<64x288xbf16, #tpu.memory_space<vmem>>, vector<64x288xbf16>
    %c0_33 = arith.constant 0 : index
    %c0_34 = arith.constant 0 : index
    %49 = vector.load %arg11[%c0_33, %c0_34] : memref<288x256xbf16, #tpu.memory_space<vmem>>, vector<288x256xbf16>
    %cst_35 = arith.constant dense<0.000000e+00> : vector<64x256xf32>
    %50 = tpu.matmul %48, %49, %cst_35 {dimension_numbers = #tpu.dot_dimension_numbers<[1], [0], [0], [1], [0, 0, 1, 1], [], []>} : vector<64x288xbf16>, vector<288x256xbf16>, vector<64x256xf32> -> vector<64x256xf32>
    %c0_36 = arith.constant 0 : index
    %c0_37 = arith.constant 0 : index
    %51 = memref.load %arg7[%c0_36, %c0_37] : memref<1x1xf32, #tpu.memory_space<smem>>
    %52 = vector.extract_strided_slice %50 {offsets = [0, 0], sizes = [32, 256], strides = [1, 1]} : vector<64x256xf32> to vector<32x256xf32>
    %c0_38 = arith.constant 0 : index
    %c0_39 = arith.constant 0 : index
    %53 = vector.load %arg4[%c0_38, %c0_39] : memref<32x1xf32, #tpu.memory_space<vmem>>, vector<32x1xf32>
    %54 = vector.broadcast %53 : vector<32x1xf32> to vector<32x256xf32>
    %55 = arith.addf %52, %54 : vector<32x256xf32>
    %cst_40 = arith.constant 0.000000e+00 : f32
    %56 = vector.broadcast %cst_40 : f32 to vector<32x256xf32>
    %57 = arith.cmpf ogt, %55, %56 : vector<32x256xf32>
    %58 = vector.broadcast %51 : f32 to vector<32x256xf32>
    %59 = arith.mulf %58, %55 : vector<32x256xf32>
    %60 = arith.select %57, %55, %59 : vector<32x256xi1>, vector<32x256xf32>
    %61 = vector.extract_strided_slice %50 {offsets = [32, 0], sizes = [32, 256], strides = [1, 1]} : vector<64x256xf32> to vector<32x256xf32>
    %c0_41 = arith.constant 0 : index
    %c128_42 = arith.constant 128 : index
    %62 = vector.load %arg10[%c0_41, %c128_42] : memref<32x512xf32, #tpu.memory_space<vmem>>, vector<32x256xf32>
    tpu.vector_store %arg10[%c0_41, %c128_42], %60 {strides = array<i32>} : memref<32x512xf32, #tpu.memory_space<vmem>>, vector<32x256xf32>,
    %c0_43 = arith.constant 0 : index
    %c111_44 = arith.constant 111 : index
    %63 = vector.load %arg10[%c0_43, %c111_44] : memref<32x512xf32, #tpu.memory_space<vmem>>, vector<32x256xf32>
    %64 = vector.broadcast %4 : vector<1x256xf32> to vector<32x256xf32>
    %65 = arith.mulf %63, %64 : vector<32x256xf32>
    %66 = arith.truncf %65 : vector<32x256xf32> to vector<32x256xbf16>
    %c0_45 = arith.constant 0 : index
    %c0_46 = arith.constant 0 : index
    %67 = vector.load %arg11[%c0_45, %c0_46] : memref<288x256xbf16, #tpu.memory_space<vmem>>, vector<32x256xbf16>
    tpu.vector_store %arg11[%c0_45, %c0_46], %66 {strides = array<i32>} : memref<288x256xbf16, #tpu.memory_space<vmem>>, vector<32x256xbf16>,
    %c0_47 = arith.constant 0 : index
    %c112_48 = arith.constant 112 : index
    %68 = vector.load %arg10[%c0_47, %c112_48] : memref<32x512xf32, #tpu.memory_space<vmem>>, vector<32x256xf32>
    %69 = arith.truncf %68 : vector<32x256xf32> to vector<32x256xbf16>
    %c32_49 = arith.constant 32 : index
    %c0_50 = arith.constant 0 : index
    %70 = vector.load %arg11[%c32_49, %c0_50] : memref<288x256xbf16, #tpu.memory_space<vmem>>, vector<32x256xbf16>
    tpu.vector_store %arg11[%c32_49, %c0_50], %69 {strides = array<i32>} : memref<288x256xbf16, #tpu.memory_space<vmem>>, vector<32x256xbf16>,
    %c0_51 = arith.constant 0 : index
    %c113_52 = arith.constant 113 : index
    %71 = vector.load %arg10[%c0_51, %c113_52] : memref<32x512xf32, #tpu.memory_space<vmem>>, vector<32x256xf32>
    %72 = vector.broadcast %5 : vector<1x256xf32> to vector<32x256xf32>
    %73 = arith.mulf %71, %72 : vector<32x256xf32>
    %74 = arith.truncf %73 : vector<32x256xf32> to vector<32x256xbf16>
    %c64_53 = arith.constant 64 : index
    %c0_54 = arith.constant 0 : index
    %75 = vector.load %arg11[%c64_53, %c0_54] : memref<288x256xbf16, #tpu.memory_space<vmem>>, vector<32x256xbf16>
    tpu.vector_store %arg11[%c64_53, %c0_54], %74 {strides = array<i32>} : memref<288x256xbf16, #tpu.memory_space<vmem>>, vector<32x256xbf16>,
    %c0_55 = arith.constant 0 : index
    %c127_56 = arith.constant 127 : index
    %76 = vector.load %arg10[%c0_55, %c127_56] : memref<32x512xf32, #tpu.memory_space<vmem>>, vector<32x256xf32>
    %77 = vector.broadcast %4 : vector<1x256xf32> to vector<32x256xf32>
    %78 = arith.mulf %76, %77 : vector<32x256xf32>
    %79 = arith.truncf %78 : vector<32x256xf32> to vector<32x256xbf16>
    %c96_57 = arith.constant 96 : index
    %c0_58 = arith.constant 0 : index
    %80 = vector.load %arg11[%c96_57, %c0_58] : memref<288x256xbf16, #tpu.memory_space<vmem>>, vector<32x256xbf16>
    tpu.vector_store %arg11[%c96_57, %c0_58], %79 {strides = array<i32>} : memref<288x256xbf16, #tpu.memory_space<vmem>>, vector<32x256xbf16>,
    %c0_59 = arith.constant 0 : index
    %c128_60 = arith.constant 128 : index
    %81 = vector.load %arg10[%c0_59, %c128_60] : memref<32x512xf32, #tpu.memory_space<vmem>>, vector<32x256xf32>
    %82 = arith.truncf %81 : vector<32x256xf32> to vector<32x256xbf16>
    %c128_61 = arith.constant 128 : index
    %c0_62 = arith.constant 0 : index
    %83 = vector.load %arg11[%c128_61, %c0_62] : memref<288x256xbf16, #tpu.memory_space<vmem>>, vector<32x256xbf16>
    tpu.vector_store %arg11[%c128_61, %c0_62], %82 {strides = array<i32>} : memref<288x256xbf16, #tpu.memory_space<vmem>>, vector<32x256xbf16>,
    %c0_63 = arith.constant 0 : index
    %c129_64 = arith.constant 129 : index
    %84 = vector.load %arg10[%c0_63, %c129_64] : memref<32x512xf32, #tpu.memory_space<vmem>>, vector<32x256xf32>
    %85 = vector.broadcast %5 : vector<1x256xf32> to vector<32x256xf32>
    %86 = arith.mulf %84, %85 : vector<32x256xf32>
    %87 = arith.truncf %86 : vector<32x256xf32> to vector<32x256xbf16>
    %c160_65 = arith.constant 160 : index
    %c0_66 = arith.constant 0 : index
    %88 = vector.load %arg11[%c160_65, %c0_66] : memref<288x256xbf16, #tpu.memory_space<vmem>>, vector<32x256xbf16>
    tpu.vector_store %arg11[%c160_65, %c0_66], %87 {strides = array<i32>} : memref<288x256xbf16, #tpu.memory_space<vmem>>, vector<32x256xbf16>,
    %c0_67 = arith.constant 0 : index
    %c143_68 = arith.constant 143 : index
    %89 = vector.load %arg10[%c0_67, %c143_68] : memref<32x512xf32, #tpu.memory_space<vmem>>, vector<32x256xf32>
    %90 = vector.broadcast %4 : vector<1x256xf32> to vector<32x256xf32>
    %91 = arith.mulf %89, %90 : vector<32x256xf32>
    %92 = arith.truncf %91 : vector<32x256xf32> to vector<32x256xbf16>
    %c192_69 = arith.constant 192 : index
    %c0_70 = arith.constant 0 : index
    %93 = vector.load %arg11[%c192_69, %c0_70] : memref<288x256xbf16, #tpu.memory_space<vmem>>, vector<32x256xbf16>
    tpu.vector_store %arg11[%c192_69, %c0_70], %92 {strides = array<i32>} : memref<288x256xbf16, #tpu.memory_space<vmem>>, vector<32x256xbf16>,
    %c0_71 = arith.constant 0 : index
    %c144_72 = arith.constant 144 : index
    %94 = vector.load %arg10[%c0_71, %c144_72] : memref<32x512xf32, #tpu.memory_space<vmem>>, vector<32x256xf32>
    %95 = arith.truncf %94 : vector<32x256xf32> to vector<32x256xbf16>
    %c224_73 = arith.constant 224 : index
    %c0_74 = arith.constant 0 : index
    %96 = vector.load %arg11[%c224_73, %c0_74] : memref<288x256xbf16, #tpu.memory_space<vmem>>, vector<32x256xbf16>
    tpu.vector_store %arg11[%c224_73, %c0_74], %95 {strides = array<i32>} : memref<288x256xbf16, #tpu.memory_space<vmem>>, vector<32x256xbf16>,
    %c0_75 = arith.constant 0 : index
    %c145_76 = arith.constant 145 : index
    %97 = vector.load %arg10[%c0_75, %c145_76] : memref<32x512xf32, #tpu.memory_space<vmem>>, vector<32x256xf32>
    %98 = vector.broadcast %5 : vector<1x256xf32> to vector<32x256xf32>
    %99 = arith.mulf %97, %98 : vector<32x256xf32>
    %100 = arith.truncf %99 : vector<32x256xf32> to vector<32x256xbf16>
    %c256_77 = arith.constant 256 : index
    %c0_78 = arith.constant 0 : index
    %101 = vector.load %arg11[%c256_77, %c0_78] : memref<288x256xbf16, #tpu.memory_space<vmem>>, vector<32x256xbf16>
    tpu.vector_store %arg11[%c256_77, %c0_78], %100 {strides = array<i32>} : memref<288x256xbf16, #tpu.memory_space<vmem>>, vector<32x256xbf16>,
    %c0_79 = arith.constant 0 : index
    %c0_80 = arith.constant 0 : index
    %102 = vector.load %arg3[%c0_79, %c0_80] : memref<32x288xbf16, #tpu.memory_space<vmem>>, vector<32x288xbf16>
    %c0_81 = arith.constant 0 : index
    %c0_82 = arith.constant 0 : index
    %103 = vector.load %arg11[%c0_81, %c0_82] : memref<288x256xbf16, #tpu.memory_space<vmem>>, vector<288x256xbf16>
    %cst_83 = arith.constant dense<0.000000e+00> : vector<32x256xf32>
    %104 = tpu.matmul %102, %103, %cst_83 {dimension_numbers = #tpu.dot_dimension_numbers<[1], [0], [0], [1], [0, 0, 1, 1], [], []>} : vector<32x288xbf16>, vector<288x256xbf16>, vector<32x256xf32> -> vector<32x256xf32>
    %105 = arith.addf %104, %61 : vector<32x256xf32>
    %c0_84 = arith.constant 0 : index
    %c0_85 = arith.constant 0 : index
    %106 = vector.load %arg5[%c0_84, %c0_85] : memref<32x1xf32, #tpu.memory_space<vmem>>, vector<32x1xf32>
    %107 = vector.broadcast %106 : vector<32x1xf32> to vector<32x256xf32>
    %108 = arith.addf %105, %107 : vector<32x256xf32>
    %c0_86 = arith.constant 0 : index
    %c0_87 = arith.constant 0 : index
    %c0_88 = arith.constant 0 : index
    %109 = vector.load %arg1[%c0_86, %c0_87, %c0_88] : memref<1x32x256xf32, #tpu.memory_space<vmem>>, vector<1x32x256xf32>
    %110 = vector.shape_cast %109 : vector<1x32x256xf32> to vector<32x256xf32>
    %111 = arith.addf %108, %110 : vector<32x256xf32>
    %c0_89 = arith.constant 0 : index
    %c0_90 = arith.constant 0 : index
    %112 = memref.load %arg8[%c0_89, %c0_90] : memref<1x1xf32, #tpu.memory_space<smem>>
    %cst_91 = arith.constant 0.000000e+00 : f32
    %113 = vector.broadcast %cst_91 : f32 to vector<32x256xf32>
    %114 = arith.cmpf ogt, %111, %113 : vector<32x256xf32>
    %115 = vector.broadcast %112 : f32 to vector<32x256xf32>
    %116 = arith.mulf %115, %111 : vector<32x256xf32>
    %117 = arith.select %114, %111, %116 : vector<32x256xi1>, vector<32x256xf32>
    %c0_92 = arith.constant 0 : index
    %c0_93 = arith.constant 0 : index
    %c0_94 = arith.constant 0 : index
    %118 = vector.load %arg9[%c0_92, %c0_93, %c0_94] : memref<1x32x256xf32, #tpu.memory_space<vmem>>, vector<1x32x256xf32>
    %119 = vector.shape_cast %118 : vector<1x32x256xf32> to vector<32x256xf32>
    %120 = vector.shape_cast %117 : vector<32x256xf32> to vector<1x32x256xf32>
    tpu.vector_store %arg9[%c0_92, %c0_93, %c0_94], %120 {strides = array<i32>} : memref<1x32x256xf32, #tpu.memory_space<vmem>>, vector<1x32x256xf32>,
    return
  }
  func.func @transform_0(%arg0: i32) -> (i32, i32, i32) {
    %c0_i32 = arith.constant 0 : i32
    %c0_i32_0 = arith.constant 0 : i32
    %c0_i32_1 = arith.constant 0 : i32
    return %arg0, %c0_i32, %c0_i32_0 : i32, i32, i32
  }
  func.func @transform_1(%arg0: i32) -> (i32, i32) {
    %c0_i32 = arith.constant 0 : i32
    %c0_i32_0 = arith.constant 0 : i32
    %c0_i32_1 = arith.constant 0 : i32
    return %c0_i32, %c0_i32_0 : i32, i32
  }
  func.func @transform_2(%arg0: i32) -> (i32, i32) {
    %c0_i32 = arith.constant 0 : i32
    %c0_i32_0 = arith.constant 0 : i32
    %c0_i32_1 = arith.constant 0 : i32
    return %c0_i32, %c0_i32_0 : i32, i32
  }
  func.func @transform_3(%arg0: i32) -> (i32, i32) {
    %c0_i32 = arith.constant 0 : i32
    %c0_i32_0 = arith.constant 0 : i32
    %c0_i32_1 = arith.constant 0 : i32
    return %c0_i32, %c0_i32_0 : i32, i32
  }
  func.func @transform_4(%arg0: i32) -> (i32, i32) {
    %c0_i32 = arith.constant 0 : i32
    %c0_i32_0 = arith.constant 0 : i32
    %c0_i32_1 = arith.constant 0 : i32
    return %c0_i32, %c0_i32_0 : i32, i32
  }
  func.func @transform_5(%arg0: i32) -> (i32, i32) {
    %c0_i32 = arith.constant 0 : i32
    %c0_i32_0 = arith.constant 0 : i32
    %c0_i32_1 = arith.constant 0 : i32
    return %c0_i32, %c0_i32_0 : i32, i32
  }
  func.func @transform_6(%arg0: i32) -> (i32, i32) {
    %c0_i32 = arith.constant 0 : i32
    %c0_i32_0 = arith.constant 0 : i32
    %c0_i32_1 = arith.constant 0 : i32
    return %c0_i32, %c0_i32_0 : i32, i32
  }
  func.func @transform_7(%arg0: i32) -> (i32, i32) {
    %c0_i32 = arith.constant 0 : i32
    %c0_i32_0 = arith.constant 0 : i32
    %c0_i32_1 = arith.constant 0 : i32
    return %c0_i32, %c0_i32_0 : i32, i32
  }
  func.func @transform_8(%arg0: i32) -> (i32, i32, i32) {
    %c0_i32 = arith.constant 0 : i32
    %c0_i32_0 = arith.constant 0 : i32
    %c0_i32_1 = arith.constant 0 : i32
    return %arg0, %c0_i32, %c0_i32_0 : i32, i32, i32
  }
}

</mosaic_0001>

<bundles_post_ra>
// kernel: rdblock_pallas.1
= control target key start
LH: loop header
LB: loop body
LE: loop exit
PB: predicated region body
PF: predicated region fallthrough
CT: control target
= control target key end

     0   :  { %s3295_s9 = smov 0   ;;  %s4427_s0 = inlined_call_operand.vmem [shape: f32[2,32,256], index: 0, kind: input, shape index: {}]   ;;  %s4428_s1 = inlined_call_operand.vmem [shape: bf16[64,288], index: 1, kind: input, shape index: {}]   ;;  %s4429_s2 = inlined_call_operand.vmem [shape: bf16[32,288], index: 2, kind: input, shape index: {}]   ;;  %s4430_s3 = inlined_call_operand.vmem [shape: f32[32,1], index: 3, kind: input, shape index: {}]   ;;  %s4431_s4 = inlined_call_operand.vmem [shape: f32[32,1], index: 4, kind: input, shape index: {}]   ;;  %s4432_s5 = inlined_call_operand.vmem [shape: f32[2,256], index: 5, kind: input, shape index: {}]   ;;  %s4433_s6 = inlined_call_operand.<no memory space> [shape: f32[1,1], index: 6, kind: input, shape index: {}]   ;;  %s4434_s7 = inlined_call_operand.<no memory space> [shape: f32[1,1], index: 7, kind: input, shape index: {}]   ;;  %s4435_s8 = inlined_call_operand.vmem [shape: f32[2,32,256], index: 8, kind: output, shape index: {}]  }
   0x1   :  { %13 = sst [smem:[#allocation4]] %s4433_s6 }
   0x2   :  { %14 = sst [smem:[#allocation5]] %s4434_s7 }
   0x3 LB: > { %s2725_s10 = sadd.s32 4294967295, %s3231_s9   ;;  %p2729_p0 = scmp.ge.s32.totalorder %s3231_s9, 1  ;;  %s3231_s9 = sphi %s3295_s9, %s20_s9  }
   0x4   : > { %p264_p1 = scmp.lt.s32.totalorder %s3231_s9, 3 }
   0x6   : > { %p265_p2 = pnand %p2729_p0, %p264_p1 }
   0x7   : > { %p298_p3 = scmp.lt.s32.totalorder (!%p265_p2), %s2725_s10, 1  ;;  %s3233_s13 = smov (!%p265_p2), 127  }
   0x8   : > { %268 = sbr.rel (%p265_p2) target bundleno = 1089 (0x441), region = 52  ;;  %s3234_s14 = smov (!%p265_p2), 113  }
   0x9   : > { %s3235_s15 = smov (!%p265_p2), 17   ;;  %s3237_s20 = smov (!%p265_p2), 111  }
   0xa   : > { %s3238_s21 = smov (!%p265_p2), 16   ;;  %s3239_s22 = smov (!%p265_p2), 15  }
   0xb   : > { %s3240_s23 = smov (!%p265_p2), 1   ;;  %s3241_s24 = smov (!%p265_p2), 112  }
   0xc   : > { %s1516_s7 = sld [smem:[#allocation4]] (!%p265_p2) }
   0xd   : > { %v317_v0 = vld [vmem:[%s4432_s5] ss:$2 sm:$0x3]  ;;  %v2734_v2 = vld [vmem:[%s4432_s5 + $0x1] ss:$2 sm:$0x3] }
   0xe   : > { %v349_v1 = vperm.slane %v317_v0, 0  ;;  %v3309_v3 = vperm.slane %v2734_v2, 0  ;;  %s4437_s10 = smov (!%p298_p3, %s2725_s10), 1  ;;  %v350_v4 = vperm.slane %v317_v0, 1  ;;  %v3318_v5 = vperm.slane %v2734_v2, 1  ;;  %s2636_s26 = sld [smem:[#allocation5]] }
   0xf   : > { %s3109_s16 = sshll.u32 %s4437_s10, 6  ;;  %v3236_v7 = vmov 0.0   ;;  %vm608_vm0 = vcmask 1039360   ;;  %vm518_vm1 = vcmask 924672   ;;  %vm412_vm2 = vcmask 1043456  }
  0x10   : > { %604 = vrot.lane.b32.xlu0 %v349_v1, %s3233_s13  ;;  %514 = vrot.lane.b32.xlu1 %v3309_v3, %s3234_s14  ;;  %s3331_s19 = scalar_lea.vmem %s4427_s0, %s3109_s16  ;;  %vm483_vm3 = vcmask 130048   ;;  %vm414_vm4 = vcmask 138240   ;;  %vm355_vm5 = vcmask 908288   ;;  %vm576_vm6 = vcmask 121856   ;;  %s4389_s29 = scalar_lea.vmem %s4435_s8, %s3109_s16 }
  0x11   : > { %959 = vrot.lane.b32.xlu2 %v3309_v3, %s3235_s15  ;;  %v3334_v6 = vld [vmem:[%s3331_s19 + $0x30] sm:$0xff]  ;;  %v3341_v9 = vld [vmem:[%s3331_s19 + $0x20] sm:$0xff]  ;;  %v3345_v10 = vld [vmem:[%s3331_s19 + $0x28] sm:$0xff]  ;;  %vm666_vm7 = vcmask 7168   ;;  %vm931_vm8 = vcmask 916480   ;;  %vm1329_vm9 = vcmask 261120  }
  0x12   : > { %v448_v8 = vpack.c.bf16 %v3334_v6, %v3236_v7  ;;  %v3348_v11 = vld [vmem:[%s3331_s19] sm:$0xff]  ;;  %v446_v12 = vpack.c.bf16 %v3341_v9, %v3236_v7  ;;  %v447_v13 = vpack.c.bf16 %v3345_v10, %v3345_v10  ;;  %v3359_v15 = vld [vmem:[%s3331_s19 + $0x38] sm:$0xff]  ;;  %v3363_v16 = vld [vmem:[%s3331_s19 + $0x10] sm:$0xff] }
  0x13   : > { %v442_v14 = vpack.c.bf16 %v3348_v11, %v3236_v7  ;;  %v449_v17 = vpack.c.bf16 %v3359_v15, %v3359_v15  ;;  %v444_v18 = vpack.c.bf16 %v3363_v16, %v3236_v7  ;;  %v3372_v19 = vld [vmem:[%s3331_s19 + $0x8] sm:$0xff]  ;;  %v3380_v21 = vld [vmem:[%s3331_s19 + $0x18] sm:$0xff] }
  0x14   : > { %v443_v20 = vpack.c.bf16 %v3372_v19, %v3372_v19  ;;  %v445_v22 = vpack.c.bf16 %v3380_v21, %v3380_v21 }
  0x18   : > { %606 = vrot.lane.b32.xlu0 %v350_v4, %s3233_s13  ;;  %516 = vrot.lane.b32.xlu1 %v3318_v5, %s3234_s14 }
  0x19   : > { %961 = vrot.lane.b32.xlu2 %v3318_v5, %s3235_s15 }
  0x20   : > { %351 = vrot.lane.b32.xlu0 %v349_v1, %s3237_s20  ;;  %353 = vrot.lane.b32.xlu1 %v350_v4, %s3237_s20 }
  0x21   : > { %470 = vrot.lane.b32.xlu2 %v448_v8, %s3238_s21 }
  0x28   : > { %466 = vrot.lane.b32.xlu0 %v446_v12, %s3238_s21  ;;  %468 = vrot.lane.b32.xlu1 %v447_v13, %s3238_s21 }
  0x29   : > { %458 = vrot.lane.b32.xlu2 %v442_v14, %s3238_s21 }
  0x30   : > { %472 = vrot.lane.b32.xlu0 %v449_v17, %s3238_s21  ;;  %462 = vrot.lane.b32.xlu1 %v444_v18, %s3238_s21 }
  0x31   : > { %464 = vrot.lane.b32.xlu2 %v445_v22, %s3238_s21 }
  0x38   : > { %460 = vrot.lane.b32.xlu0 %v443_v20, %s3238_s21  ;;  %802 = vrot.lane.b32.xlu1 %v350_v4, %s3239_s22 }
  0x40   : > { %800 = vrot.lane.b32.xlu0 %v349_v1, %s3239_s22 }
  0x6b   : > { %v3387_v26 = vpop.permute.xlu2 %959 }
  0x73   : > { %v3406_v39 = vpop.permute.xlu2 %961 }
  0x74   : > { %v970_v41 = vmul.f32 0.0, %v3406_v39 }
  0x76   : > { %v3416_v44 = vpack.c.bf16 %v970_v41, %v970_v41 }
  0x7b   : > { %v471_v63 = vpop.permute.xlu2 %470 }
  0x7c   : > { %v480_v8 = vrot.slane %v471_v63, 4 }
  0x82   : > { %v605_v23 = vpop.permute.xlu0 %604  ;;  %v515_v24 = vpop.permute.xlu1 %514 }
  0x83   : > { %v3441_v54 = vmul.f32 0.0, %v605_v23  ;;  %v3452_v59 = vmul.f32 0.0, %v515_v24 }
  0x8a   : > { %v3385_v25 = vpop.permute.xlu0 %606  ;;  %v3395_v30 = vpop.permute.xlu1 %516 }
  0x8b   : > { %v615_v27 = vmul.f32 %v3385_v25, %v3372_v19  ;;  %v621_v28 = vmul.f32 %v3385_v25, %v3345_v10  ;;  %v624_v29 = vmul.f32 %v3385_v25, %v3359_v15  ;;  %v534_v34 = vmul.f32 %v3395_v30, %v3359_v15 }
  0x8c   : > { %v531_v35 = vmul.f32 %v3395_v30, %v3345_v10  ;;  %v618_v36 = vmul.f32 %v3385_v25, %v3380_v21  ;;  %v525_v42 = vmul.f32 %v3395_v30, %v3372_v19  ;;  %v528_v43 = vmul.f32 %v3395_v30, %v3380_v21 }
  0x8d   : > { %v626_v31 = vpack.c.bf16 %v615_v27, %v615_v27  ;;  %v630_v32 = vpack.c.bf16 %v621_v28, %v621_v28  ;;  %v632_v33 = vpack.c.bf16 %v624_v29, %v624_v29  ;;  %v542_v37 = vpack.c.bf16 %v534_v34, %v534_v34 }
  0x8e   : > { %v540_v38 = vpack.c.bf16 %v531_v35, %v531_v35  ;;  %v628_v40 = vpack.c.bf16 %v618_v36, %v618_v36  ;;  %v536_v45 = vpack.c.bf16 %v525_v42, %v525_v42  ;;  %v538_v46 = vpack.c.bf16 %v528_v43, %v528_v43 }
  0x8f   : > { %643 = vrot.lane.b32.xlu1 %v626_v31, %s3240_s23  ;;  %651 = vrot.lane.b32.xlu0 %v630_v32, %s3240_s23  ;;  %v3428_v50 = vsel %vm608_vm0, %v605_v23, %v3385_v25  ;;  %v3446_v57 = vsel %vm518_vm1, %v515_v24, %v3395_v30  ;;  %v459_v24 = vpop.permute.xlu2 %458  ;;  %v693_v35 = vpack.c.bf16 %v3359_v15, %v3334_v6 }
  0x90   : > { %655 = vrot.lane.b32.xlu2 %v632_v33, %s3240_s23  ;;  %v623_v53 = vmul.f32 %v3428_v50, %v3334_v6  ;;  %v530_v60 = vmul.f32 %v3446_v57, %v3341_v9  ;;  %v614_v61 = vmul.f32 %v3428_v50, %v3348_v11  ;;  %v527_v13 = vmul.f32 %v3446_v57, %v3363_v16 }
  0x91   : > { %v533_v14 = vmul.f32 %v3446_v57, %v3334_v6  ;;  %v620_v20 = vmul.f32 %v3428_v50, %v3341_v9  ;;  %v3480_v33 = vsel %vm414_vm4, %v3387_v26, %v3406_v39  ;;  %v974_v36 = vmul.f32 %v3387_v26, %v3341_v9  ;;  %697 = vst [vmem:[#allocation3 + $0x98] sm:$0xff] %v693_v35 }
  0x92   : > { %v3418_v47 = vpop.permute.xlu1 %353  ;;  %v3437_v52 = vpop.permute.xlu0 %351  ;;  %v631_v56 = vpack.c.bf16 %v623_v53, %v3441_v54  ;;  %v539_v0 = vpack.c.bf16 %v530_v60, %v3452_v59  ;;  %v625_v1 = vpack.c.bf16 %v614_v61, %v3441_v54  ;;  %v537_v29 = vpack.c.bf16 %v527_v13, %v3452_v59 }
  0x93   : > { %v368_v48 = vmul.f32 %v3418_v47, %v3345_v10  ;;  %v371_v51 = vmul.f32 %v3418_v47, %v3359_v15  ;;  %v362_v62 = vmul.f32 %v3418_v47, %v3372_v19  ;;  %v541_v31 = vpack.c.bf16 %v533_v14, %v3452_v59 }
  0x94   : > { %v629_v34 = vpack.c.bf16 %v620_v20, %v3441_v54  ;;  %v978_v39 = vmul.f32 %v3480_v33, %v3359_v15  ;;  %v3501_v43 = vsel %vm355_vm5, %v3437_v52, %v3418_v47  ;;  %v972_v53 = vmul.f32 %v3480_v33, %v3380_v21 }
  0x95   : > { %v377_v49 = vpack.c.bf16 %v368_v48, %v368_v48  ;;  %v379_v55 = vpack.c.bf16 %v371_v51, %v371_v51  ;;  %v373_v2 = vpack.c.bf16 %v362_v62, %v362_v62  ;;  %v474_v48 = vrot.slane %v459_v24, 4 }
  0x96   : > { %v971_v51 = vmul.f32 %v3387_v26, %v3363_v16  ;;  %v3514_v60 = vmul.f32 0.0, %v3437_v52  ;;  %v367_v61 = vmul.f32 %v3501_v43, %v3341_v9  ;;  %v364_v14 = vmul.f32 %v3501_v43, %v3363_v16 }
  0x97   : > { %565 = vrot.lane.b32.xlu1 %v542_v37, %s3239_s22  ;;  %647 = vrot.lane.b32.xlu0 %v628_v40, %s3240_s23  ;;  %v975_v37 = vmul.f32 %v3480_v33, %v3345_v10  ;;  %v617_v40 = vmul.f32 %v3428_v50, %v3363_v16  ;;  %v969_v20 = vmul.f32 %v3480_v33, %v3372_v19 }
  0x98   : > { %561 = vrot.lane.b32.xlu2 %v540_v38, %s3239_s22  ;;  %v977_v38 = vmul.f32 %v3387_v26, %v3334_v6  ;;  %v376_v52 = vpack.c.bf16 %v367_v61, %v3514_v60 }
  0x99   : > { %v984_v41 = vpack.c.bf16 %v975_v37, %v974_v36 }
  0x9a   : > { %v467_v58 = vpop.permute.xlu0 %466  ;;  %v469_v12 = vpop.permute.xlu1 %468  ;;  %v986_v42 = vpack.c.bf16 %v978_v39, %v977_v38  ;;  %v3242_v39 = vmov 0.0|0.0  }
  0x9b   : > { %v478_v4 = vrot.slane %v467_v58, 4  ;;  %v479_v17 = vrot.slane %v469_v12, 4  ;;  %v982_v12 = vpack.c.bf16 %v972_v53, %v971_v51 }
  0x9d   : > { %v487_v23 = vsel %vm412_vm2, %v478_v4, %v479_v17  ;;  %v361_v17 = vmul.f32 %v3501_v43, %v3348_v11 }
  0x9e   : > { %v488_v27 = vsel %vm483_vm3, %v467_v58, %v487_v23 }
  0x9f   : > { %1010 = vrot.lane.b32.xlu1 %v3416_v44, %s3237_s20  ;;  %553 = vrot.lane.b32.xlu0 %v536_v45, %s3239_s22  ;;  %497 = vst [vmem:[#allocation3 + $0x30] sm:$0xff] %v488_v27  ;;  %v627_v45 = vpack.c.bf16 %v617_v40, %v3441_v54  ;;  %v372_v23 = vpack.c.bf16 %v361_v17, %v3514_v60 }
  0xa0   : > { %557 = vrot.lane.b32.xlu2 %v538_v46, %s3239_s22  ;;  %v465_v46 = vpop.permute.xlu2 %464  ;;  %v690_v27 = vpack.c.bf16 %v3372_v19, %v3348_v11 }
  0xa2   : > { %v473_v18 = vpop.permute.xlu0 %472  ;;  %694 = vst [vmem:[#allocation3 + $0x80] sm:$0xff] %v690_v27 }
  0xa3   : > { %v481_v22 = vrot.slane %v473_v18, 4  ;;  %v968_v18 = vmul.f32 %v3387_v26, %v3348_v11 }
  0xa5   : > { %v489_v28 = vsel %vm412_vm2, %v480_v8, %v481_v22  ;;  %v374_v22 = vpack.c.bf16 %v364_v14, %v3514_v60 }
  0xa6   : > { %v490_v32 = vsel %vm483_vm3, %v471_v63, %v489_v28  ;;  %v691_v28 = vpack.c.bf16 %v3380_v21, %v3363_v16 }
  0xa7   : > { %398 = vrot.lane.b32.xlu1 %v377_v49, %s3235_s15  ;;  %998 = vrot.lane.b32.xlu0 %v3416_v44, %s3237_s20  ;;  %498 = vst [vmem:[#allocation3 + $0x38] sm:$0xff] %v490_v32  ;;  %v477_v49 = vrot.slane %v465_v46, 4 }
  0xa8   : > { %1006 = vrot.lane.b32.xlu2 %v3416_v44, %s3237_s20  ;;  %695 = vst [vmem:[#allocation3 + $0x88] sm:$0xff] %v691_v28 }
  0xaa   : > { %v461_v58 = vpop.permute.xlu0 %460 }
  0xab   : > { %v475_v63 = vrot.slane %v461_v58, 4 }
  0xaf   : > { %653 = vrot.lane.b32.xlu1 %v631_v56, %s3240_s23  ;;  %402 = vrot.lane.b32.xlu0 %v379_v55, %s3235_s15  ;;  %v692_v55 = vpack.c.bf16 %v3345_v10, %v3341_v9  ;;  %v463_v56 = vpop.permute.xlu1 %462 }
  0xb0   : > { %1002 = vrot.lane.b32.xlu2 %v3416_v44, %s3237_s20  ;;  %v476_v62 = vrot.slane %v463_v56, 4 }
  0xb1   : > { %696 = vst [vmem:[#allocation3 + $0x90] sm:$0xff] %v692_v55 }
  0xb2   : > { %v3559_v37 = vpop.permute.xlu0 %800 }
  0xb3   : > { %v812_v51 = vmul.f32 %v3559_v37, %v3363_v16  ;;  %v818_v61 = vmul.f32 %v3559_v37, %v3334_v6 }
  0xb7   : > { %559 = vrot.lane.b32.xlu1 %v539_v0, %s3239_s22  ;;  %641 = vrot.lane.b32.xlu0 %v625_v1, %s3240_s23  ;;  %v524_v0 = vmul.f32 %v3446_v57, %v3348_v11  ;;  %v485_v1 = vsel %vm412_vm2, %v476_v62, %v477_v49  ;;  %v803_v36 = vpop.permute.xlu1 %802 }
  0xb8   : > { %390 = vrot.lane.b32.xlu2 %v373_v2, %s3235_s15  ;;  %v482_v2 = vsel %vm412_vm2, %v474_v48, %v475_v63  ;;  %v486_v4 = vsel %vm483_vm3, %v463_v56, %v485_v1 }
  0xb9   : > { %v484_v8 = vsel %vm483_vm3, %v459_v24, %v482_v2  ;;  %496 = vst [vmem:[#allocation3 + $0x28] sm:$0xff] %v486_v4  ;;  %v535_v13 = vpack.c.bf16 %v524_v0, %v3452_v59  ;;  %v980_v24 = vpack.c.bf16 %v969_v20, %v968_v18 }
  0xba   : > { %495 = vst [vmem:[#allocation3 + $0x20] sm:$0xff] %v484_v8 }
  0xbf   : > { %555 = vrot.lane.b32.xlu1 %v537_v29, %s3239_s22  ;;  %563 = vrot.lane.b32.xlu0 %v541_v31, %s3239_s22  ;;  %v365_v29 = vmul.f32 %v3418_v47, %v3380_v21  ;;  %v370_v31 = vmul.f32 %v3501_v43, %v3334_v6 }
  0xc0   : > { %649 = vrot.lane.b32.xlu2 %v629_v34, %s3240_s23 }
  0xc1   : > { %v375_v32 = vpack.c.bf16 %v365_v29, %v365_v29  ;;  %v378_v34 = vpack.c.bf16 %v370_v31, %v3514_v60 }
  0xc7   : > { %1004 = vrot.lane.b32.xlu1 %v984_v41, %s3237_s20  ;;  %1008 = vrot.lane.b32.xlu0 %v986_v42, %s3237_s20  ;;  %v811_v42 = vmul.f32 0.0, %v803_v36 }
  0xc8   : > { %645 = vrot.lane.b32.xlu2 %v627_v45, %s3240_s23 }
  0xc9   : > { %v3582_v46 = vpack.c.bf16 %v811_v42, %v811_v42 }
  0xcf   : > { %1000 = vrot.lane.b32.xlu1 %v982_v12, %s3237_s20  ;;  %396 = vrot.lane.b32.xlu0 %v376_v52, %s3235_s15 }
  0xd0   : > { %551 = vrot.lane.b32.xlu2 %v535_v13, %s3239_s22 }
  0xd7   : > { %392 = vrot.lane.b32.xlu0 %v374_v22, %s3235_s15  ;;  %388 = vrot.lane.b32.xlu1 %v372_v23, %s3235_s15 }
  0xd8   : > { %996 = vrot.lane.b32.xlu2 %v980_v24, %s3237_s20 }
  0xdf   : > { %712 = vrot.lane.b32.xlu0 %v3318_v5, %s3240_s23  ;;  %394 = vrot.lane.b32.xlu1 %v375_v32, %s3235_s15  ;;  %v3563_v5 = vsel %vm576_vm6, %v3559_v37, %v803_v36 }
  0xe0   : > { %400 = vrot.lane.b32.xlu2 %v378_v34, %s3235_s15  ;;  %v813_v53 = vmul.f32 %v3563_v5, %v3380_v21  ;;  %v810_v56 = vmul.f32 %v3563_v5, %v3372_v19  ;;  %v819_v62 = vmul.f32 %v3563_v5, %v3359_v15 }
  0xe2   : > { %v823_v63 = vpack.c.bf16 %v813_v53, %v812_v51  ;;  %v827_v1 = vpack.c.bf16 %v819_v62, %v818_v61 }
  0xe7   : > { %918 = vrot.lane.b32.xlu0 %v693_v35, %s3241_s24  ;;  %914 = vrot.lane.b32.xlu1 %v692_v55, %s3241_s24  ;;  %v815_v35 = vmul.f32 %v3559_v37, %v3341_v9  ;;  %v809_v55 = vmul.f32 %v3559_v37, %v3348_v11 }
  0xe8   : > { %710 = vrot.lane.b32.xlu2 %v3309_v3, %s3240_s23  ;;  %v816_v3 = vmul.f32 %v3563_v5, %v3345_v10 }
  0xe9   : > { %v821_v0 = vpack.c.bf16 %v810_v56, %v809_v55 }
  0xea   : > { %v656_v38 = vpop.permute.xlu2 %655  ;;  %v825_v41 = vpack.c.bf16 %v816_v3, %v815_v35 }
  0xeb   : > { %v664_v29 = vrot.slane %v656_v38, 4 }
  0xef   : > { %908 = vrot.lane.b32.xlu0 %v3242_v39, %s3241_s24  ;;  %920 = vrot.lane.b32.xlu1 %v3242_v39, %s3241_s24 }
  0xf0   : > { %916 = vrot.lane.b32.xlu2 %v3242_v39, %s3241_s24 }
  0xf2   : > { %v3575_v40 = vpop.permute.xlu2 %561 }
  0xf3   : > { %v572_v53 = vrot.slane %v3575_v40, 4 }
  0xf7   : > { %845 = vrot.lane.b32.xlu0 %v825_v41, %s3234_s14  ;;  %910 = vrot.lane.b32.xlu1 %v691_v28, %s3241_s24 }
  0xf8   : > { %906 = vrot.lane.b32.xlu2 %v690_v27, %s3241_s24 }
  0xfa   : > { %v3580_v45 = vpop.permute.xlu2 %557 }
  0xff   : > { %851 = vrot.lane.b32.xlu0 %v3582_v46, %s3234_s14  ;;  %847 = vrot.lane.b32.xlu1 %v3582_v46, %s3234_s14 }
 0x100   : > { %912 = vrot.lane.b32.xlu2 %v3242_v39, %s3241_s24 }
 0x101   : > { %v644_v48 = vpop.permute.xlu1 %643  ;;  %v652_v49 = vpop.permute.xlu0 %651 }
 0x102   : > { %v3598_v58 = vpop.permute.xlu2 %1006  ;;  %v662_v20 = vrot.slane %v652_v49, 4  ;;  %v658_v55 = vrot.slane %v644_v48, 4 }
 0x107   : > { %841 = vrot.lane.b32.xlu0 %v823_v63, %s3234_s14  ;;  %837 = vrot.lane.b32.xlu1 %v821_v0, %s3234_s14 }
 0x108   : > { %849 = vrot.lane.b32.xlu2 %v827_v1, %s3234_s14 }
 0x109   : > { %v3607_v2 = vpop.permute.xlu1 %565  ;;  %v648_v4 = vpop.permute.xlu0 %647 }
 0x10a   : > { %v3609_v8 = vpop.permute.xlu2 %1002  ;;  %v660_v34 = vrot.slane %v648_v4, 4 }
 0x10f   : > { %843 = vrot.lane.b32.xlu1 %v3582_v46, %s3234_s14 }
 0x110   : > { %839 = vrot.lane.b32.xlu2 %v3582_v46, %s3234_s14 }
 0x111   : > { %v3615_v12 = vpop.permute.xlu1 %1010  ;;  %v554_v52 = vpop.permute.xlu0 %553 }
 0x112   : > { %v3617_v13 = vpop.permute.xlu2 %390  ;;  %v568_v62 = vrot.slane %v554_v52, 4 }
 0x119   : > { %v3619_v14 = vpop.permute.xlu1 %398  ;;  %v999_v17 = vpop.permute.xlu0 %998 }
 0x11a   : > { %v650_v18 = vpop.permute.xlu2 %649 }
 0x11b   : > { %v661_v22 = vrot.slane %v650_v18, 4 }
 0x11d   : > { %v670_v23 = vsel %vm412_vm2, %v661_v22, %v662_v20 }
 0x11e   : > { %v671_v24 = vsel %vm666_vm7, %v650_v18, %v670_v23 }
 0x11f   : > { %680 = vst [vmem:[#allocation3 + $0x70] sm:$0xff] %v671_v24 }
 0x121   : > { %v654_v27 = vpop.permute.xlu1 %653  ;;  %v3623_v28 = vpop.permute.xlu0 %402 }
 0x122   : > { %v663_v31 = vrot.slane %v654_v27, 4  ;;  %v646_v32 = vpop.permute.xlu2 %645 }
 0x123   : > { %v659_v36 = vrot.slane %v646_v32, 4 }
 0x124   : > { %v672_v35 = vsel %vm412_vm2, %v663_v31, %v664_v29 }
 0x125   : > { %v673_v3 = vsel %vm666_vm7, %v654_v27, %v672_v35  ;;  %v668_v41 = vsel %vm412_vm2, %v659_v36, %v660_v34  ;;  %v574_v34 = vrot.slane %v3607_v2, 4 }
 0x126   : > { %681 = vst [vmem:[#allocation3 + $0x78] sm:$0xff] %v673_v3  ;;  %v669_v42 = vsel %vm666_vm7, %v646_v32, %v668_v41  ;;  %v2841_v4 = vld [vmem:[#allocation3 + $0x70] sm:$0xf]  ;;  %v3137_v24 = vld [vmem:[#allocation3 + $0x74] sm:$0xf]  ;;  %v570_v32 = vrot.slane %v3580_v45, 4 }
 0x127   : > { %679 = vst [vmem:[#allocation3 + $0x68] sm:$0xff] %v669_v42  ;;  %v1013_v41 = vrot.slane %v999_v17, 4 }
 0x129   : > { %v560_v49 = vpop.permute.xlu1 %559  ;;  %v642_v51 = vpop.permute.xlu0 %641 }
 0x12a   : > { %v571_v38 = vrot.slane %v560_v49, 4  ;;  %v657_v56 = vrot.slane %v642_v51, 4  ;;  %v552_v61 = vpop.permute.xlu2 %551 }
 0x12b   : > { %v567_v63 = vrot.slane %v552_v61, 4 }
 0x12c   : > { %v580_v0 = vsel %vm412_vm2, %v571_v38, %v572_v53  ;;  %v665_v1 = vsel %vm412_vm2, %v657_v56, %v658_v55 }
 0x12d   : > { %v581_v18 = vsel %vm576_vm6, %v560_v49, %v580_v0  ;;  %v667_v20 = vsel %vm666_vm7, %v642_v51, %v665_v1  ;;  %v575_v22 = vsel %vm412_vm2, %v567_v63, %v568_v62  ;;  %v3138_v23 = vld [vmem:[#allocation3 + $0x74] sm:$0xf0]  ;;  %v2843_v40 = vld [vmem:[#allocation3 + $0x78] sm:$0xf0] }
 0x12e   : > { %590 = vst [vmem:[#allocation3 + $0x50] sm:$0xff] %v581_v18  ;;  %v577_v48 = vsel %vm576_vm6, %v552_v61, %v575_v22  ;;  %v2842_v27 = vor.u32 %v3138_v23, %v2841_v4  ;;  %v2846_v52 = vor.u32 %v3137_v24, %v2843_v40  ;;  %v3136_v56 = vld [vmem:[#allocation3 + $0x64] sm:$0xf0]  ;;  %v2835_v61 = vld [vmem:[#allocation3 + $0x68] sm:$0xf0]  ;;  %v1017_v4 = vrot.slane %v3598_v58, 4 }
 0x12f   : > { %678 = vst [vmem:[#allocation3 + $0x60] sm:$0xff] %v667_v20  ;;  %v1019_v18 = vrot.slane %v3615_v12, 4  ;;  %v411_v24 = vrot.slane %v3623_v28, 4 }
 0x130   : > { %588 = vst [vmem:[#allocation3 + $0x40] sm:$0xff] %v577_v48  ;;  %1342 = vmatpush.bf16.msra.mxu0 %v2842_v27  ;;  %1429 = vmatpush.bf16.msra.mxu3 %v2846_v52 }
 0x131   : > { %v556_v29 = vpop.permute.xlu1 %555  ;;  %v564_v31 = vpop.permute.xlu0 %563 }
 0x132   : > { %v569_v36 = vrot.slane %v556_v29, 4  ;;  %v573_v35 = vrot.slane %v564_v31, 4  ;;  %v997_v3 = vpop.permute.xlu2 %996 }
 0x133   : > { %v1012_v42 = vrot.slane %v997_v3, 4 }
 0x134   : > { %v578_v49 = vsel %vm412_vm2, %v569_v36, %v570_v32  ;;  %v582_v51 = vsel %vm412_vm2, %v573_v35, %v574_v34 }
 0x135   : > { %v579_v53 = vsel %vm576_vm6, %v556_v29, %v578_v49  ;;  %v583_v55 = vsel %vm576_vm6, %v564_v31, %v582_v51  ;;  %v1020_v38 = vsel %vm412_vm2, %v1012_v42, %v1013_v41  ;;  %v2825_v32 = vld [vmem:[#allocation3 + $0x50] sm:$0xf]  ;;  %v3133_v58 = vld [vmem:[#allocation3 + $0x54] sm:$0xf]  ;;  %v1015_v42 = vrot.slane %v3609_v8, 4 }
 0x136   : > { %589 = vst [vmem:[#allocation3 + $0x48] sm:$0xff] %v579_v53  ;;  %v1022_v45 = vsel %vm355_vm5, %v997_v3, %v1020_v38  ;;  %v2833_v2 = vld [vmem:[#allocation3 + $0x60] sm:$0xf]  ;;  %v3135_v62 = vld [vmem:[#allocation3 + $0x64] sm:$0xf]  ;;  %v409_v49 = vrot.slane %v3619_v14, 4 }
 0x137   : > { %591 = vst [vmem:[#allocation3 + $0x58] sm:$0xff] %v583_v55  ;;  %v2834_v17 = vor.u32 %v3136_v56, %v2833_v2  ;;  %v2838_v63 = vor.u32 %v3135_v62, %v2835_v61  ;;  %v2817_v56 = vld [vmem:[#allocation3 + $0x40] sm:$0xf]  ;;  %v3131_v61 = vld [vmem:[#allocation3 + $0x44] sm:$0xf] }
 0x138   : > { %1033 = vst [vmem:[#allocation3 + $0x100] sm:$0xff] %v1022_v45  ;;  %v3130_v8 = vld [vmem:[#allocation3 + $0x34] sm:$0xf0] }
 0x139   : > { %1343 = vmatpush.bf16.msra.mxu0 %v2834_v17  ;;  %1430 = vmatpush.bf16.msra.mxu3 %v2838_v63  ;;  %v1005_v0 = vpop.permute.xlu1 %1004  ;;  %v1009_v1 = vpop.permute.xlu0 %1008 }
 0x13a   : > { %v1016_v20 = vrot.slane %v1005_v0, 4  ;;  %v1018_v22 = vrot.slane %v1009_v1, 4  ;;  %v401_v23 = vpop.permute.xlu2 %400 }
 0x13b   : > { %v410_v40 = vrot.slane %v401_v23, 4 }
 0x13c   : > { %v1025_v48 = vsel %vm412_vm2, %v1016_v20, %v1017_v4  ;;  %v1027_v27 = vsel %vm412_vm2, %v1018_v22, %v1019_v18  ;;  %v3129_v18 = vld [vmem:[#allocation3 + $0x34] sm:$0xf]  ;;  %v2811_v20 = vld [vmem:[#allocation3 + $0x38] sm:$0xf0] }
 0x13d   : > { %v1026_v52 = vsel %vm355_vm5, %v1005_v0, %v1025_v48  ;;  %v1028_v29 = vsel %vm355_vm5, %v1009_v1, %v1027_v27  ;;  %v420_v31 = vsel %vm412_vm2, %v410_v40, %v411_v24  ;;  %v3132_v3 = vld [vmem:[#allocation3 + $0x44] sm:$0xf0]  ;;  %v2819_v41 = vld [vmem:[#allocation3 + $0x48] sm:$0xf0]  ;;  %v2809_v0 = vld [vmem:[#allocation3 + $0x30] sm:$0xf]  ;;  %v2814_v40 = vor.u32 %v3129_v18, %v2811_v20 }
 0x13e   : > { %1035 = vst [vmem:[#allocation3 + $0x110] sm:$0xff] %v1026_v52  ;;  %v421_v12 = vsel %vm414_vm4, %v401_v23, %v420_v31  ;;  %v3134_v34 = vld [vmem:[#allocation3 + $0x54] sm:$0xf0]  ;;  %v2827_v36 = vld [vmem:[#allocation3 + $0x58] sm:$0xf0]  ;;  %v2818_v45 = vor.u32 %v3132_v3, %v2817_v56  ;;  %v2822_v2 = vor.u32 %v3131_v61, %v2819_v41  ;;  %v2810_v23 = vor.u32 %v3130_v8, %v2809_v0 }
 0x13f   : > { %1036 = vst [vmem:[#allocation3 + $0x118] sm:$0xff] %v1028_v29  ;;  %v2826_v28 = vor.u32 %v3134_v34, %v2825_v32  ;;  %v2830_v35 = vor.u32 %v3133_v58, %v2827_v36  ;;  %v2801_v48 = vld [vmem:[#allocation3 + $0x20] sm:$0xf]  ;;  %v3128_v27 = vld [vmem:[#allocation3 + $0x24] sm:$0xf0]  ;;  %v3243_v52 = vmov 0  }
 0x140   : > { %429 = vst [vmem:[#allocation3 + $0x18] sm:$0xff] %v421_v12  ;;  %3222 = vset.pattern.permute.xlu1 %v3243_v52  ;;  %3224 = vset.pattern.permute.xlu0 %v3243_v52  ;;  %v3127_v32 = vld [vmem:[#allocation3 + $0x24] sm:$0xf]  ;;  %v2803_v58 = vld [vmem:[#allocation3 + $0x28] sm:$0xf0]  ;;  %v405_v12 = vrot.slane %v3617_v13, 4  ;;  %v2802_v36 = vor.u32 %v3128_v27, %v2801_v48 }
 0x141   : > { %1344 = vmatpush.bf16.msra.mxu0 %v2826_v28  ;;  %1431 = vmatpush.bf16.msra.mxu3 %v2830_v35  ;;  %v1001_v51 = vpop.permute.xlu1 %1000  ;;  %v397_v53 = vpop.permute.xlu0 %396  ;;  %v2806_v35 = vor.u32 %v3127_v32, %v2803_v58  ;;  %v2913_v3 = vld [vmem:[#allocation3 + $0x100] sm:$0xf] }
 0x142   : > { %v1014_v55 = vrot.slane %v1001_v51, 4  ;;  %v408_v38 = vrot.slane %v397_v53, 4  ;;  %v3657_v63 = vpop.permute.xlu2 %710  ;;  %3223 = vset.pattern.permute.xlu2 %v3243_v52 }
 0x144   : > { %v1023_v62 = vsel %vm412_vm2, %v1014_v55, %v1015_v42  ;;  %v418_v17 = vsel %vm412_vm2, %v408_v38, %v409_v49 }
 0x145   : > { %v1024_v14 = vsel %vm355_vm5, %v1001_v51, %v1023_v62  ;;  %v419_v1 = vsel %vm414_vm4, %v397_v53, %v418_v17  ;;  %1345 = vmatpush.bf16.msra.mxu0 %v2818_v45  ;;  %1432 = vmatpush.bf16.msra.mxu3 %v2822_v2  ;;  %v2921_v4 = vld [vmem:[#allocation3 + $0x110] sm:$0xf]  ;;  %v725_v62 = vmul.f32 %v3657_v63, %v3341_v9  ;;  %v3157_v58 = vld [vmem:[#allocation3 + $0x114] sm:$0xf] }
 0x146   : > { %1034 = vst [vmem:[#allocation3 + $0x108] sm:$0xff] %v1024_v14  ;;  %v3158_v22 = vld [vmem:[#allocation3 + $0x114] sm:$0xf0]  ;;  %v728_v17 = vmul.f32 %v3657_v63, %v3334_v6 }
 0x147   : > { %428 = vst [vmem:[#allocation3 + $0x10] sm:$0xff] %v419_v1  ;;  %v2922_v24 = vor.u32 %v3158_v22, %v2921_v4  ;;  %v3126_v42 = vld [vmem:[#allocation3 + $0x14] sm:$0xf0]  ;;  %v2795_v51 = vld [vmem:[#allocation3 + $0x18] sm:$0xf0] }
 0x149   : > { %1346 = vmatpush.bf16.msra.mxu0 %v2810_v23  ;;  %1406 = vmatpush.bf16.msra.mxu2 %v2922_v24  ;;  %v393_v29 = vpop.permute.xlu0 %392  ;;  %v389_v31 = vpop.permute.xlu1 %388 }
 0x14a   : > { %1433 = vmatpush.bf16.msra.mxu3 %v2814_v40  ;;  %v404_v34 = vrot.slane %v389_v31, 4  ;;  %v917_v53 = vpop.permute.xlu2 %916  ;;  %v406_v0 = vrot.slane %v393_v29, 4 }
 0x14c   : > { %v413_v28 = vsel %vm412_vm2, %v404_v34, %v405_v12  ;;  %v2923_v12 = vld [vmem:[#allocation3 + $0x118] sm:$0xf0] }
 0x14d   : > { %v415_v41 = vsel %vm414_vm4, %v389_v31, %v413_v28  ;;  %1347 = vmatpush.bf16.msra.mxu0 %v2802_v36  ;;  %v3156_v49 = vld [vmem:[#allocation3 + $0x104] sm:$0xf0] }
 0x14e   : > { %426 = vst [vmem:[#allocation3] sm:$0xff] %v415_v41  ;;  %1434 = vmatpush.bf16.msra.mxu3 %v2806_v35  ;;  %v2793_v55 = vld [vmem:[#allocation3 + $0x10] sm:$0xf]  ;;  %v2914_v38 = vor.u32 %v3156_v49, %v2913_v3  ;;  %v3125_v13 = vld [vmem:[#allocation3 + $0x14] sm:$0xf]  ;;  %v2926_v3 = vor.u32 %v3157_v58, %v2923_v12 }
 0x14f   : > { %v2794_v56 = vor.u32 %v3126_v42, %v2793_v55  ;;  %v2798_v61 = vor.u32 %v3125_v13, %v2795_v51  ;;  %v2915_v49 = vld [vmem:[#allocation3 + $0x108] sm:$0xf0]  ;;  %v722_v55 = vmul.f32 %v3657_v63, %v3363_v16 }
 0x150   : > { %1407 = vmatpush.bf16.msra.mxu2 %v2914_v38 }
 0x151   : > { %1348 = vmatpush.bf16.msra.mxu0 %v2794_v56  ;;  %v713_v45 = vpop.permute.xlu0 %712  ;;  %v395_v2 = vpop.permute.xlu1 %394 }
 0x152   : > { %1435 = vmatpush.bf16.msra.mxu3 %v2798_v61  ;;  %v3670_v8 = vsel %vm666_vm7, %v3657_v63, %v713_v45  ;;  %v721_v14 = vmul.f32 0.0, %v713_v45  ;;  %v407_v1 = vrot.slane %v395_v2, 4  ;;  %v907_v24 = vpop.permute.xlu2 %906  ;;  %v3155_v61 = vld [vmem:[#allocation3 + $0x104] sm:$0xf] }
 0x153   : > { %v726_v4 = vmul.f32 %v3670_v8, %v3345_v10  ;;  %v729_v18 = vmul.f32 %v3670_v8, %v3359_v15  ;;  %v927_v10 = vrot.slane %v917_v53, 4  ;;  %v719_v15 = vmul.f32 %v3657_v63, %v3348_v11 }
 0x154   : > { %v3676_v20 = vpack.c.bf16 %v721_v14, %v721_v14  ;;  %v416_v9 = vsel %vm412_vm2, %v406_v0, %v407_v1  ;;  %v720_v40 = vmul.f32 %v3670_v8, %v3372_v19  ;;  %v922_v41 = vrot.slane %v907_v24, 4  ;;  %v1519_v0 = vld [vmem:[%s4430_s3 + $0x10] sm:$0xff] }
 0x155   : > { %v417_v6 = vsel %vm414_vm4, %v393_v29, %v416_v9  ;;  %v735_v22 = vpack.c.bf16 %v726_v4, %v725_v62  ;;  %v737_v23 = vpack.c.bf16 %v729_v18, %v728_v17  ;;  %v2785_v32 = vld [vmem:[#allocation3] sm:$0xf]  ;;  %v3123_v28 = vld [vmem:[#allocation3 + $0x4] sm:$0xf]  ;;  %v723_v38 = vmul.f32 %v3670_v8, %v3380_v21 }
 0x156   : > { %427 = vst [vmem:[#allocation3 + $0x8] sm:$0xff] %v417_v6  ;;  %757 = vrot.lane.b32.xlu0 %v3676_v20, %s3233_s13  ;;  %v731_v31 = vpack.c.bf16 %v720_v40, %v719_v15  ;;  %v2918_v2 = vor.u32 %v3155_v61, %v2915_v49  ;;  %v1517_v6 = vld [vmem:[%s4430_s3] sm:$0xff] }
 0x157   : > { %755 = vrot.lane.b32.xlu2 %v735_v22, %s3233_s13  ;;  %759 = vrot.lane.b32.xlu1 %v737_v23, %s3233_s13  ;;  %v733_v1 = vpack.c.bf16 %v723_v38, %v722_v55  ;;  %v1520_v22 = vld [vmem:[%s4430_s3 + $0x18] sm:$0xff] }
 0x159   : > { %v919_v48 = vpop.permute.xlu0 %918  ;;  %v915_v27 = vpop.permute.xlu1 %914 }
 0x15a   : > { %v926_v52 = vrot.slane %v915_v27, 4  ;;  %v928_v42 = vrot.slane %v919_v48, 4  ;;  %v913_v45 = vpop.permute.xlu2 %912 }
 0x15b   : > { %v925_v21 = vrot.slane %v913_v45, 4 }
 0x15c   : > { %v935_v29 = vsel %vm412_vm2, %v926_v52, %v927_v10  ;;  %v1518_v10 = vld [vmem:[%s4430_s3 + $0x8] sm:$0xff] }
 0x15d   : > { %v936_v34 = vsel %vm931_vm8, %v915_v27, %v935_v29  ;;  %v3124_v36 = vld [vmem:[#allocation3 + $0x4] sm:$0xf0]  ;;  %v2787_v35 = vld [vmem:[#allocation3 + $0x8] sm:$0xf0] }
 0x15e   : > { %945 = vst [vmem:[#allocation3 + $0xf0] sm:$0xff] %v936_v34  ;;  %747 = vrot.lane.b32.xlu0 %v731_v31, %s3233_s13  ;;  %v2786_v11 = vor.u32 %v3124_v36, %v2785_v32  ;;  %v2790_v19 = vor.u32 %v3123_v28, %v2787_v35 }
 0x15f   : > { %761 = vrot.lane.b32.xlu2 %v3676_v20, %s3233_s13  ;;  %749 = vrot.lane.b32.xlu1 %v3676_v20, %s3233_s13 }
 0x160   : > { %1349 = vmatpush.bf16.msra.mxu0 %v2786_v11  ;;  %1436 = vmatpush.bf16.msra.mxu3 %v2790_v19 }
 0x161   : > { %v909_v51 = vpop.permute.xlu0 %908  ;;  %v921_v53 = vpop.permute.xlu1 %920 }
 0x162   : > { %v923_v13 = vrot.slane %v909_v51, 4  ;;  %v929_v56 = vrot.slane %v921_v53, 4  ;;  %v850_v40 = vpop.permute.xlu2 %849 }
 0x163   : > { %v859_v34 = vrot.slane %v850_v40, 4 }
 0x164   : > { %1493 = vmatpush.bf16.msrb.mxu0 %v2926_v3  ;;  %v930_v62 = vsel %vm412_vm2, %v922_v41, %v923_v13  ;;  %v937_v17 = vsel %vm412_vm2, %v928_v42, %v929_v56 }
 0x165   : > { %v932_v14 = vsel %vm931_vm8, %v907_v24, %v930_v62  ;;  %v938_v16 = vsel %vm931_vm8, %v919_v48, %v937_v17  ;;  %v2905_v24 = vld [vmem:[#allocation3 + $0xf0] sm:$0xf]  ;;  %v3153_v15 = vld [vmem:[#allocation3 + $0xf4] sm:$0xf] }
 0x166   : > { %943 = vst [vmem:[#allocation3 + $0xe0] sm:$0xff] %v932_v14  ;;  %753 = vrot.lane.b32.xlu0 %v3676_v20, %s3233_s13 }
 0x167   : > { %946 = vst [vmem:[#allocation3 + $0xf8] sm:$0xff] %v938_v16  ;;  %751 = vrot.lane.b32.xlu2 %v733_v1, %s3233_s13  ;;  %1533 = vperm.xlu1 %3222, %v1519_v0  }
 0x168   : > { %1494 = vmatpush.bf16.msrb.mxu0 %v2918_v2 }
 0x169   : > { %v846_v4 = vpop.permute.xlu0 %845  ;;  %v911_v18 = vpop.permute.xlu1 %910 }
 0x16a   : > { %v924_v9 = vrot.slane %v911_v18, 4  ;;  %v857_v32 = vrot.slane %v846_v4, 4  ;;  %v840_v49 = vpop.permute.xlu2 %839 }
 0x16b   : > { %v854_v13 = vrot.slane %v840_v49, 4 }
 0x16c   : > { %v933_v23 = vsel %vm412_vm2, %v924_v9, %v925_v21 }
 0x16d   : > { %v934_v48 = vsel %vm931_vm8, %v911_v18, %v933_v23  ;;  %v2897_v35 = vld [vmem:[#allocation3 + $0xe0] sm:$0xf]  ;;  %v3151_v11 = vld [vmem:[#allocation3 + $0xe4] sm:$0xf] }
 0x16e   : > { %944 = vst [vmem:[#allocation3 + $0xe8] sm:$0xff] %v934_v48  ;;  %1523 = vperm.xlu0 %3224, %v1517_v6   ;;  %v3154_v27 = vld [vmem:[#allocation3 + $0xf4] sm:$0xf0]  ;;  %v2907_v52 = vld [vmem:[#allocation3 + $0xf8] sm:$0xf0] }
 0x16f   : > { %1538 = vperm.xlu2 %3223, %v1520_v22   ;;  %1528 = vperm.xlu1 %3222, %v1518_v10   ;;  %v2906_v29 = vor.u32 %v3154_v27, %v2905_v24  ;;  %v2910_v31 = vor.u32 %v3153_v15, %v2907_v52  ;;  %v3113_v48 = vld [vmem:[%s4428_s1 + $0x10] sm:$0xf0]  ;;  %v2737_v52 = vld [vmem:[%s4428_s1] sm:$0xf] }
 0x171   : > { %v852_v58 = vpop.permute.xlu0 %851  ;;  %v848_v12 = vpop.permute.xlu1 %847  ;;  %1371 = vmatpush.bf16.msra.mxu1 %v2906_v29  ;;  %1458 = vmatpush.bf16.msrb.mxu2 %v2910_v31  ;;  %v3112_v29 = vld [vmem:[%s4428_s1 + $0x8] sm:$0xf0] }
 0x172   : > { %v860_v36 = vrot.slane %v852_v58, 4  ;;  %v858_v28 = vrot.slane %v848_v12, 4  ;;  %v2738_v31 = vor.u32 %v3112_v29, %v2737_v52  ;;  %v3116_v58 = vld [vmem:[%s4428_s1 + $0x28] sm:$0xf0] }
 0x174   : > { %v868_v19 = vsel %vm412_vm2, %v859_v34, %v860_v36  ;;  %v866_v3 = vsel %vm412_vm2, %v857_v32, %v858_v28  ;;  %1350 = vmatmul.bf16.vlgmr.msra.gmra.mxu0 %v2738_v31  ;;  %1437 = vmatmul.bf16.vlgmr.msra.gmra.mxu3 %v2738_v31  ;;  %v2757_v32 = vld [vmem:[%s4428_s1 + $0x20] sm:$0xf]  ;;  %v2749_v34 = vld [vmem:[%s4428_s1 + $0x18] sm:$0xf]  ;;  %v3115_v36 = vld [vmem:[%s4428_s1 + $0x20] sm:$0xf0] }
 0x175   : > { %v869_v41 = vsel %vm518_vm1, %v850_v40, %v868_v19  ;;  %v867_v42 = vsel %vm518_vm1, %v846_v4, %v866_v3  ;;  %v3152_v51 = vld [vmem:[#allocation3 + $0xe4] sm:$0xf0]  ;;  %v2899_v53 = vld [vmem:[#allocation3 + $0xe8] sm:$0xf0]  ;;  %v3772_v12 = vor.u32 %v3116_v58, %v2757_v32  ;;  %v2750_v28 = vor.u32 %v3115_v36, %v2749_v34  ;;  %v2761_v3 = vld [vmem:[%s4428_s1 + $0x30] sm:$0xf] }
 0x176   : > { %877 = vst [vmem:[#allocation3 + $0xd8] sm:$0xff] %v869_v41  ;;  %2104 = vrot.lane.b32.xlu0 %v3242_v39, %s3241_s24  ;;  %v2898_v55 = vor.u32 %v3152_v51, %v2897_v35  ;;  %v2902_v38 = vor.u32 %v3151_v11, %v2899_v53  ;;  %v2769_v35 = vld [vmem:[%s4428_s1 + $0x38] sm:$0xf]  ;;  %v3119_v11 = vld [vmem:[%s4428_s1 + $0x40] sm:$0xf0] }
 0x177   : > { %876 = vst [vmem:[#allocation3 + $0xd0] sm:$0xff] %v867_v42  ;;  %2108 = vrot.lane.b32.xlu2 %v3242_v39, %s3241_s24  ;;  %2100 = vrot.lane.b32.xlu1 %v3242_v39, %s3241_s24  ;;  %v3788_v19 = vor.u32 %v3119_v11, %v2769_v35  ;;  %v3118_v41 = vld [vmem:[%s4428_s1 + $0x38] sm:$0xf0]  ;;  %v2781_v51 = vld [vmem:[%s4428_s1 + $0x50] sm:$0xf] }
 0x178   : > { %1372 = vmatpush.bf16.msra.mxu1 %v2898_v55  ;;  %1459 = vmatpush.bf16.msrb.mxu2 %v2902_v38  ;;  %v2762_v49 = vor.u32 %v3118_v41, %v2761_v3  ;;  %v3122_v53 = vld [vmem:[%s4428_s1 + $0x58] sm:$0xf0]  ;;  %v2857_v36 = vld [vmem:[#allocation3 + $0x90] sm:$0xf]  ;;  %v3141_v11 = vld [vmem:[#allocation3 + $0x94] sm:$0xf] }
 0x179   : > { %v838_v56 = vpop.permute.xlu1 %837  ;;  %v842_v16 = vpop.permute.xlu0 %841  ;;  %v3804_v55 = vor.u32 %v3122_v53, %v2781_v51  ;;  %v2859_v3 = vld [vmem:[#allocation3 + $0x98] sm:$0xf0] }
 0x17a   : > { %v853_v61 = vrot.slane %v838_v56, 4  ;;  %v855_v18 = vrot.slane %v842_v16, 4 }
 0x17c   : > { %v861_v45 = vsel %vm412_vm2, %v853_v61, %v854_v13 }
 0x17d   : > { %v863_v2 = vsel %vm518_vm1, %v838_v56, %v861_v45  ;;  %v3150_v62 = vld [vmem:[#allocation3 + $0xd4] sm:$0xf0]  ;;  %v2891_v17 = vld [vmem:[#allocation3 + $0xd8] sm:$0xf0] }
 0x17e   : > { %874 = vst [vmem:[#allocation3 + $0xc0] sm:$0xff] %v863_v2  ;;  %2040 = vrot.lane.b32.xlu0 %v3582_v46, %s3234_s14  ;;  %v2889_v0 = vld [vmem:[#allocation3 + $0xd0] sm:$0xf]  ;;  %v3149_v14 = vld [vmem:[#allocation3 + $0xd4] sm:$0xf] }
 0x17f   : > { %2096 = vrot.lane.b32.xlu2 %v3242_v39, %s3241_s24  ;;  %2036 = vrot.lane.b32.xlu1 %v3582_v46, %s3234_s14  ;;  %v2890_v1 = vor.u32 %v3150_v62, %v2889_v0  ;;  %v2894_v21 = vor.u32 %v3149_v14, %v2891_v17  ;;  %v2773_v17 = vld [vmem:[%s4428_s1 + $0x48] sm:$0xf]  ;;  %v3121_v0 = vld [vmem:[%s4428_s1 + $0x50] sm:$0xf0] }
 0x181   : > { %1373 = vmatpush.bf16.msra.mxu1 %v2890_v1  ;;  %1460 = vmatpush.bf16.msrb.mxu2 %v2894_v21  ;;  %v844_v4 = vpop.permute.xlu1 %843 }
 0x182   : > { %v856_v9 = vrot.slane %v844_v4, 4 }
 0x184   : > { %v864_v6 = vsel %vm412_vm2, %v855_v18, %v856_v9  ;;  %1355 = vmatmul.bf16.gmra.mxu0 %v2750_v28  ;;  %1442 = vmatmul.bf16.gmra.mxu3 %v2750_v28  ;;  %v3142_v28 = vld [vmem:[#allocation3 + $0x94] sm:$0xf0] }
 0x185   : > { %v865_v22 = vsel %vm518_vm1, %v842_v16, %v864_v6  ;;  %v2881_v39 = vld [vmem:[#allocation3 + $0xc0] sm:$0xf]  ;;  %v3147_v10 = vld [vmem:[#allocation3 + $0xc4] sm:$0xf]  ;;  %v2774_v16 = vor.u32 %v3121_v0, %v2773_v17  ;;  %v2739_v0 = vld [vmem:[%s4428_s1 + $0xc] sm:$0xf0] }
 0x186   : > { %875 = vst [vmem:[#allocation3 + $0xc8] sm:$0xff] %v865_v22  ;;  %2028 = vrot.lane.b32.xlu0 %v3582_v46, %s3234_s14  ;;  %v3111_v17 = vld [vmem:[%s4428_s1 + $0x4] sm:$0xf] }
 0x187   : > { %2032 = vrot.lane.b32.xlu2 %v3582_v46, %s3234_s14  ;;  %1960 = vrot.lane.b32.xlu1 %v3676_v20, %s3233_s13  ;;  %v2745_v46 = vld [vmem:[%s4428_s1 + $0x8] sm:$0xf] }
 0x188   : > { %v3756_v27 = vor.u32 %v3113_v48, %v2745_v46 }
 0x18a   : > { %2927 = vmatmul.msk.bf16.vlgmr.msra.gmra.mxu2 %vm1329_vm9, %v3756_v27 }
 0x18d   : > { %v3148_v23 = vld [vmem:[#allocation3 + $0xc4] sm:$0xf0]  ;;  %v2883_v24 = vld [vmem:[#allocation3 + $0xc8] sm:$0xf0] }
 0x18e   : > { %v2882_v15 = vor.u32 %v3148_v23, %v2881_v39  ;;  %v2886_v40 = vor.u32 %v3147_v10, %v2883_v24 }
 0x18f   : > { %1956 = vrot.lane.b32.xlu2 %v3676_v20, %s3233_s13  ;;  %1948 = vrot.lane.b32.xlu1 %v3676_v20, %s3233_s13 }
 0x190   : > { %1374 = vmatpush.bf16.msra.mxu1 %v2882_v15  ;;  %1461 = vmatpush.bf16.msrb.mxu2 %v2886_v40 }
 0x194   : > { %1360 = vmatmul.bf16.gmra.mxu0 %v2762_v49  ;;  %1447 = vmatmul.bf16.gmra.mxu3 %v2762_v49 }
 0x19a   : > { %2928 = vmatmul.msk.bf16.gmra.mxu2 %vm1329_vm9, %v3772_v12 }
 0x1a4   : > { %1365 = vmatmul.bf16.gmra.mxu0 %v2774_v16  ;;  %1452 = vmatmul.bf16.gmra.mxu3 %v2774_v16  ;;  %v3114_v16 = vld [vmem:[%s4428_s1 + $0x1c] sm:$0xf] }
 0x1aa   : > { %2929 = vmatmul.msk.bf16.gmra.mxu2 %vm1329_vm9, %v3788_v19 }
 0x1b1   : > { %v756_v42 = vpop.permute.xlu2 %755 }
 0x1b2   : > { %v767_v56 = vrot.slane %v756_v42, 4 }
 0x1b4   : > { %2931 = vmatmul.msk.bf16.vlgmr.msrb.gmra.mxu0 %vm1329_vm9, %v3756_v27 }
 0x1b9   : > { %v762_v38 = vpop.permute.xlu2 %761 }
 0x1ba   : > { %2930 = vmatmul.msk.bf16.gmra.mxu2 %vm1329_vm9, %v3804_v55  ;;  %v770_v2 = vrot.slane %v762_v38, 4  ;;  %v2858_v38 = vor.u32 %v3142_v28, %v2857_v36 }
 0x1c1   : > { %v752_v46 = vpop.permute.xlu2 %751 }
 0x1c2   : > { %v765_v31 = vrot.slane %v752_v46, 4 }
 0x1c4   : > { %2932 = vmatmul.msk.bf16.gmra.mxu0 %vm1329_vm9, %v3772_v12  ;;  %v3117_v12 = vld [vmem:[%s4428_s1 + $0x34] sm:$0xf] }
 0x1c8   : > { %v758_v13 = vpop.permute.xlu0 %757 }
 0x1c9   : > { %v768_v61 = vrot.slane %v758_v13, 4  ;;  %v760_v45 = vpop.permute.xlu1 %759  ;;  %v2862_v13 = vor.u32 %v3141_v11, %v2859_v3 }
 0x1ca   : > { %v769_v62 = vrot.slane %v760_v45, 4 }
 0x1cb   : > { %v776_v14 = vsel %vm412_vm2, %v767_v56, %v768_v61  ;;  %v2849_v56 = vld [vmem:[#allocation3 + $0x80] sm:$0xf]  ;;  %v3140_v61 = vld [vmem:[#allocation3 + $0x84] sm:$0xf0] }
 0x1cc   : > { %v777_v1 = vsel %vm608_vm0, %v756_v42, %v776_v14  ;;  %v778_v21 = vsel %vm412_vm2, %v769_v62, %v770_v2  ;;  %v2851_v2 = vld [vmem:[#allocation3 + $0x88] sm:$0xf0]  ;;  %v2850_v27 = vor.u32 %v3140_v61, %v2849_v56  ;;  %v2742_v14 = vor.u32 %v3111_v17, %v2739_v0 }
 0x1cd   : > { %786 = vst [vmem:[#allocation3 + $0xb0] sm:$0xff] %v777_v1  ;;  %v779_v4 = vsel %vm608_vm0, %v760_v45, %v778_v21  ;;  %v3139_v45 = vld [vmem:[#allocation3 + $0x84] sm:$0xf]  ;;  %v2751_v1 = vld [vmem:[%s4428_s1 + $0x24] sm:$0xf0] }
 0x1ce   : > { %787 = vst [vmem:[#allocation3 + $0xb8] sm:$0xff] %v779_v4  ;;  %v2854_v62 = vor.u32 %v3139_v45, %v2851_v2  ;;  %v2754_v21 = vor.u32 %v3114_v16, %v2751_v1  ;;  %v2763_v4 = vld [vmem:[%s4428_s1 + $0x3c] sm:$0xf0] }
 0x1d0   : > { %v748_v18 = vpop.permute.xlu0 %747 }
 0x1d1   : > { %v763_v9 = vrot.slane %v748_v18, 4  ;;  %v750_v6 = vpop.permute.xlu1 %749 }
 0x1d2   : > { %v764_v22 = vrot.slane %v750_v6, 4 }
 0x1d4   : > { %v771_v39 = vsel %vm412_vm2, %v763_v9, %v764_v22  ;;  %v2873_v23 = vld [vmem:[#allocation3 + $0xb0] sm:$0xf]  ;;  %v3145_v10 = vld [vmem:[#allocation3 + $0xb4] sm:$0xf]  ;;  %2933 = vmatmul.msk.bf16.gmra.mxu0 %vm1329_vm9, %v3788_v19  ;;  %v3120_v19 = vld [vmem:[%s4428_s1 + $0x4c] sm:$0xf] }
 0x1d5   : > { %v773_v24 = vsel %vm608_vm0, %v748_v18, %v771_v39  ;;  %v3146_v15 = vld [vmem:[#allocation3 + $0xb4] sm:$0xf0]  ;;  %v2875_v40 = vld [vmem:[#allocation3 + $0xb8] sm:$0xf0]  ;;  %v2766_v18 = vor.u32 %v3117_v12, %v2763_v4 }
 0x1d6   : > { %784 = vst [vmem:[#allocation3 + $0xa0] sm:$0xff] %v773_v24  ;;  %v2874_v48 = vor.u32 %v3146_v15, %v2873_v23  ;;  %v2878_v52 = vor.u32 %v3145_v10, %v2875_v40  ;;  %v2775_v9 = vld [vmem:[%s4428_s1 + $0x54] sm:$0xf0] }
 0x1d7   : > { %v2778_v6 = vor.u32 %v3120_v19, %v2775_v9 }
 0x1d8   : > { %v754_v29 = vpop.permute.xlu0 %753  ;;  %1375 = vmatpush.bf16.msra.mxu1 %v2874_v48  ;;  %1462 = vmatpush.bf16.msrb.mxu2 %v2878_v52 }
 0x1d9   : > { %v766_v32 = vrot.slane %v754_v29, 4  ;;  %v3874_v3 = vpop.permute.xlu1 %1533 }
 0x1db   : > { %v774_v58 = vsel %vm412_vm2, %v765_v31, %v766_v32 }
 0x1dc   : > { %v775_v34 = vsel %vm608_vm0, %v752_v46, %v774_v58 }
 0x1dd   : > { %785 = vst [vmem:[#allocation3 + $0xa8] sm:$0xff] %v775_v34  ;;  %v2865_v35 = vld [vmem:[#allocation3 + $0xa0] sm:$0xf]  ;;  %v3143_v42 = vld [vmem:[#allocation3 + $0xa4] sm:$0xf] }
 0x1e4   : > { %v3144_v41 = vld [vmem:[#allocation3 + $0xa4] sm:$0xf0]  ;;  %v2867_v49 = vld [vmem:[#allocation3 + $0xa8] sm:$0xf0]  ;;  %2934 = vmatmul.msk.bf16.gmra.mxu0 %vm1329_vm9, %v3804_v55 }
 0x1e5   : > { %v2866_v51 = vor.u32 %v3144_v41, %v2865_v35  ;;  %v2870_v53 = vor.u32 %v3143_v42, %v2867_v49  ;;  %v1524_v42 = vpop.permute.xlu0 %1523  ;;  %v3876_v49 = vstv %s1516_s7 }
 0x1e7   : > { %1376 = vmatpush.bf16.msra.mxu1 %v2866_v51  ;;  %1463 = vmatpush.bf16.msrb.mxu2 %v2870_v53 }
 0x1eb   : > { %1377 = vmatpush.bf16.msra.mxu1 %v2858_v38  ;;  %1464 = vmatpush.bf16.msrb.mxu2 %v2862_v13 }
 0x1ef   : > { %1378 = vmatpush.bf16.msra.mxu1 %v2850_v27  ;;  %1465 = vmatpush.bf16.msrb.mxu2 %v2854_v62 }
 0x1f1   : > { %v1351_v22 = vpop.f32.mrf.mxu0 }
 0x1f2   : > { %1379 = vmatmul.bf16.vlgmr.msra.gmra.mxu1 %v2742_v14  ;;  %1466 = vmatmul.bf16.vlgmr.msrb.gmra.mxu2 %v2742_v14 }
 0x1f7   : > { %v1438_v36 = vpop.f32.mrf.mxu3 }
 0x1f9   : > { %v1353_v23 = vpop.f32.mrf.mxu0 }
 0x1ff   : > { %v1440_v61 = vpop.f32.mrf.mxu3 }
 0x201   : > { %v1356_v24 = vpop.f32.mrf.mxu0 }
 0x202   : > { %1384 = vmatmul.bf16.gmra.mxu1 %v2754_v21  ;;  %1471 = vmatmul.bf16.gmra.mxu2 %v2754_v21  ;;  %v1529_v21 = vpop.permute.xlu1 %1528 }
 0x209   : > { %v3854_v55 = vpop.f32.mrf.mxu0 }
 0x20d   : > { %v1409_v39 = vpop.f32.mrf.mxu2 }
 0x211   : > { %v3858_v46 = vpop.f32.mrf.mxu0 }
 0x212   : > { %1389 = vmatmul.bf16.gmra.mxu1 %v2766_v18  ;;  %1476 = vmatmul.bf16.gmra.mxu2 %v2766_v18 }
 0x215   : > { %v1411_v10 = vpop.f32.mrf.mxu2 }
 0x219   : > { %v3862_v52 = vpop.f32.mrf.mxu0 }
 0x21d   : > { %v1414_v15 = vpop.f32.mrf.mxu2 }
 0x221   : > { %v3866_v31 = vpop.f32.mrf.mxu0 }
 0x222   : > { %1394 = vmatmul.bf16.gmra.mxu1 %v2778_v6  ;;  %1481 = vmatmul.bf16.gmra.mxu2 %v2778_v6 }
 0x225   : > { %v3856_v40 = vpop.f32.mrf.mxu2 }
 0x229   : > { %v3870_v58 = vpop.f32.mrf.mxu0 }
 0x22d   : > { %v3860_v48 = vpop.f32.mrf.mxu2 }
 0x231   : > { %v1496_v35 = vpop.f32.mrf.mxu0 }
 0x235   : > { %v3864_v29 = vpop.f32.mrf.mxu2 }
 0x239   : > { %v1498_v14 = vpop.f32.mrf.mxu0 }
 0x23d   : > { %v3868_v32 = vpop.f32.mrf.mxu2 }
 0x245   : > { %v3872_v34 = vpop.f32.mrf.mxu2 }
 0x26f   : > { %v1380_v28 = vpop.f32.mrf.mxu1 }
 0x270   : > { %v1381_v11 = vadd.f32 %v1380_v28, %v1351_v22 }
 0x272   : > { %v1410_v41 = vadd.f32 %v1409_v39, %v1381_v11  ;;  %v1443_v11 = vpop.f32.mrf.mxu3 }
 0x274   : > { %v1541_v51 = vadd.f32 %v1524_v42, %v1410_v41 }
 0x275   : > { %v1467_v53 = vpop.f32.mrf.mxu2 }
 0x276   : > { %vm1549_vm10 = vcmp.gt.f32.partialorder %v1541_v51, 0.0  ;;  %v1558_v38 = vmul.f32 %v3876_v49, %v1541_v51  ;;  %v1468_v13 = vadd.f32 %v1467_v53, %v1438_v36 }
 0x277   : > { %v1382_v56 = vpop.f32.mrf.mxu1 }
 0x278   : > { %v3879_v45 = vsel %vm1549_vm10, %v1541_v51, %v1558_v38  ;;  %v1383_v2 = vadd.f32 %v1382_v56, %v1353_v23  ;;  %v1497_v27 = vadd.f32 %v1496_v35, %v1468_v13  ;;  %v1501_v56 = vpop.f32.mrf.mxu0 }
 0x279   : > { %v1674_v62 = vpack.c.bf16 %v3879_v45, %v3236_v7  ;;  %v1823_v17 = vmul.f32 %v3879_v45, %v3428_v50  ;;  %v1743_v0 = vmul.f32 %v3879_v45, %v3446_v57 }
 0x27a   : > { %v1412_v16 = vadd.f32 %v1411_v10, %v1383_v2  ;;  %v1542_v1 = vadd.f32 %v1524_v42, %v1497_v27 }
 0x27b   : > { %1690 = vrot.lane.b32.xlu0 %v1674_v62, %s3238_s21  ;;  %v1834_v12 = vpack.c.bf16 %v1823_v17, %v3441_v54  ;;  %v1754_v4 = vpack.c.bf16 %v1743_v0, %v3452_v59 }
 0x27c   : > { %v1543_v18 = vadd.f32 %v1529_v21, %v1412_v16  ;;  %vm1550_vm11 = vcmp.gt.f32.partialorder %v1542_v1, 0.0  ;;  %v1559_v19 = vmul.f32 %v3876_v49, %v1542_v1 }
 0x27d   : > { %1850 = vrot.lane.b32.xlu1 %v1834_v12, %s3240_s23  ;;  %1770 = vrot.lane.b32.xlu2 %v1754_v4, %s3239_s22  ;;  %v1469_v9 = vpop.f32.mrf.mxu2 }
 0x27e   : > { %vm1551_vm12 = vcmp.gt.f32.partialorder %v1543_v18, 0.0  ;;  %v1560_v6 = vmul.f32 %v3876_v49, %v1543_v18  ;;  %v3894_v22 = vsel %vm1550_vm11, %v1542_v1, %v1559_v19  ;;  %v1470_v39 = vadd.f32 %v1469_v9, %v1440_v61  ;;  %v1539_v9 = vpop.permute.xlu2 %1538 }
 0x27f   : > { %v1385_v23 = vpop.f32.mrf.mxu1  ;;  %v3898_v10 = vpack.c.bf16 %v3894_v22, %v3879_v45 }
 0x280   : > { %v3900_v36 = vsel %vm1551_vm12, %v1543_v18, %v1560_v6  ;;  %v1386_v28 = vadd.f32 %v1385_v23, %v1356_v24  ;;  %v1499_v35 = vadd.f32 %v1498_v14, %v1470_v39  ;;  %v1445_v6 = vpop.f32.mrf.mxu3 }
 0x281   : > { %v1826_v41 = vmul.f32 %v3900_v36, %v3428_v50  ;;  %v1746_v42 = vmul.f32 %v3900_v36, %v3446_v57  ;;  %1902 = vst [vmem:[#allocation3 + $0x80] sm:$0xff] %v3898_v10  ;;  %v1676_v2 = vpack.c.bf16 %v3900_v36, %v3236_v7 }
 0x282   : > { %v1415_v51 = vadd.f32 %v1414_v15, %v1386_v28  ;;  %v1544_v53 = vadd.f32 %v1529_v21, %v1499_v35 }
 0x283   : > { %v1836_v38 = vpack.c.bf16 %v1826_v41, %v3441_v54  ;;  %v1756_v13 = vpack.c.bf16 %v1746_v42, %v3452_v59 }
 0x284   : > { %v1545_v61 = vadd.f32 %v3874_v3, %v1415_v51  ;;  %vm1552_vm13 = vcmp.gt.f32.partialorder %v1544_v53, 0.0  ;;  %v1561_v24 = vmul.f32 %v3876_v49, %v1544_v53 }
 0x285   : > { %v1472_v27 = vpop.f32.mrf.mxu2  ;;  %1854 = vrot.lane.b32.xlu0 %v1836_v38, %s3240_s23  ;;  %1774 = vrot.lane.b32.xlu1 %v1756_v13, %s3239_s22 }
 0x286   : > { %vm1553_vm14 = vcmp.gt.f32.partialorder %v1545_v61, 0.0  ;;  %v1562_v15 = vmul.f32 %v3876_v49, %v1545_v61  ;;  %v3916_v62 = vsel %vm1552_vm13, %v1544_v53, %v1561_v24  ;;  %v1473_v17 = vadd.f32 %v1472_v27, %v1443_v11  ;;  %1694 = vrot.lane.b32.xlu2 %v1676_v2, %s3238_s21 }
 0x287   : > { %v1387_v0 = vpop.f32.mrf.mxu1  ;;  %v3921_v14 = vpack.c.bf16 %v3916_v62, %v3900_v36 }
 0x288   : > { %v3923_v16 = vsel %vm1553_vm14, %v1545_v61, %v1562_v15  ;;  %v1388_v1 = vadd.f32 %v1387_v0, %v3854_v55  ;;  %v1502_v21 = vadd.f32 %v1501_v56, %v1473_v17 }
 0x289   : > { %v1749_v12 = vmul.f32 %v3923_v16, %v3446_v57  ;;  %v1829_v4 = vmul.f32 %v3923_v16, %v3428_v50  ;;  %1903 = vst [vmem:[#allocation3 + $0x88] sm:$0xff] %v3921_v14  ;;  %v1678_v55 = vpack.c.bf16 %v3923_v16, %v3236_v7  ;;  %v1601_v53 = vmul.f32 %v3923_v16, %v3501_v43 }
 0x28a   : > { %v1417_v18 = vadd.f32 %v3856_v40, %v1388_v1  ;;  %v1546_v19 = vadd.f32 %v3874_v3, %v1502_v21  ;;  %v1503_v40 = vpop.f32.mrf.mxu0 }
 0x28b   : > { %v1758_v39 = vpack.c.bf16 %v1749_v12, %v3452_v59  ;;  %v1838_v23 = vpack.c.bf16 %v1829_v4, %v3441_v54  ;;  %v1610_v27 = vpack.c.bf16 %v1601_v53, %v3514_v60 }
 0x28c   : > { %v1547_v28 = vadd.f32 %v1539_v9, %v1417_v18  ;;  %v1563_v35 = vmul.f32 %v3876_v49, %v1546_v19  ;;  %vm1554_vm10 = vcmp.gt.f32.partialorder %v1546_v19, 0.0 }
 0x28d   : > { %v1474_v11 = vpop.f32.mrf.mxu2  ;;  %1778 = vrot.lane.b32.xlu0 %v1758_v39, %s3239_s22  ;;  %1698 = vrot.lane.b32.xlu1 %v1678_v55, %s3238_s21  ;;  %v3999_v55 = vmul.f32 %v3923_v16, %v3387_v26 }
 0x28e   : > { %vm1555_vm15 = vcmp.gt.f32.partialorder %v1547_v28, 0.0  ;;  %v1564_v3 = vmul.f32 %v3876_v49, %v1547_v28  ;;  %v1475_v41 = vadd.f32 %v1474_v11, %v1445_v6  ;;  %1858 = vrot.lane.b32.xlu2 %v1838_v23, %s3240_s23  ;;  %v3944_v38 = vsel %vm1554_vm10, %v1546_v19, %v1563_v35 }
 0x28f   : > { %v3953_v15 = vpack.c.bf16 %v3944_v38, %v3923_v16  ;;  %v4003_v23 = vmul.f32 %v3944_v38, %v3480_v33  ;;  %v4012_v11 = vmul.f32 %v3900_v36, %v3387_v26 }
 0x290   : > { %v1572_v42 = vsel %vm1555_vm15, %v1547_v28, %v1564_v3  ;;  %v1504_v51 = vadd.f32 %v1503_v40, %v1475_v41  ;;  %v4007_v28 = vmul.f32 %v3894_v22, %v3480_v33  ;;  %v4016_v40 = vmul.f32 %v3916_v62, %v3480_v33 }
 0x291   : > { %v1604_v13 = vmul.f32 %v1572_v42, %v3501_v43  ;;  %v1680_v61 = vpack.c.bf16 %v1572_v42, %v3236_v7  ;;  %v1744_v7 = vmul.f32 %v3894_v22, %v3395_v30  ;;  %1904 = vst [vmem:[#allocation3 + $0x90] sm:$0xff] %v3953_v15  ;;  %v3968_v1 = vmul.f32 %v1572_v42, %v3559_v37 }
 0x292   : > { %v1548_v56 = vadd.f32 %v1539_v9, %v1504_v51  ;;  %v3975_v12 = vmul.f32 %v1572_v42, %v3657_v63  ;;  %v3991_v6 = vmul.f32 %v1572_v42, %v3387_v26  ;;  %v2162_v41 = vpack.c.bf16 %v4003_v23, %v3999_v55 }
 0x293   : > { %v1612_v24 = vpack.c.bf16 %v1604_v13, %v3514_v60  ;;  %v1755_v18 = vpack.c.bf16 %v1744_v7, %v1744_v7  ;;  %v1752_v51 = vmul.f32 %v1572_v42, %v3446_v57  ;;  %v1675_v13 = vpack.c.bf16 %v3894_v22, %v3894_v22 }
 0x294   : > { %vm1556_vm11 = vcmp.gt.f32.partialorder %v1548_v56, 0.0  ;;  %v1565_v2 = vmul.f32 %v3876_v49, %v1548_v56  ;;  %v1832_v49 = vmul.f32 %v1572_v42, %v3428_v50  ;;  %v3984_v50 = vmul.f32 %v3879_v45, %v3387_v26 }
 0x295   : > { %1702 = vrot.lane.b32.xlu0 %v1680_v61, %s3238_s21  ;;  %1634 = vrot.lane.b32.xlu1 %v1612_v24, %s3235_s15  ;;  %v2160_v26 = vpack.c.bf16 %v4016_v40, %v4012_v11  ;;  %v1827_v61 = vmul.f32 %v3916_v62, %v3385_v25  ;;  %v1824_v57 = vmul.f32 %v3894_v22, %v3385_v25  ;;  %v2589_v11 = vld [vmem:[%s4431_s4 + $0x8] sm:$0xff] }
 0x296   : > { %v3957_v17 = vsel %vm1556_vm11, %v1548_v56, %v1565_v2  ;;  %1630 = vrot.lane.b32.xlu2 %v1610_v27, %s3235_s15  ;;  %v1840_v35 = vpack.c.bf16 %v1832_v49, %v3441_v54  ;;  %v2158_v54 = vpack.c.bf16 %v4007_v28, %v3984_v50  ;;  %v1760_v56 = vpack.c.bf16 %v1752_v51, %v3452_v59  ;;  %v4053_v27 = vpop.permute.xlu2 %2108 }
 0x297   : > { %v3965_v0 = vpack.c.bf16 %v3957_v17, %v1572_v42  ;;  %v3972_v21 = vmul.f32 %v3957_v17, %v3563_v5  ;;  %v3979_v4 = vmul.f32 %v3957_v17, %v3670_v8  ;;  %v3995_v39 = vmul.f32 %v3957_v17, %v3480_v33 }
 0x298   : > { %v1919_v33 = vmul.f32 %v3894_v22, %v3670_v8  ;;  %v1837_v42 = vpack.c.bf16 %v1827_v61, %v1827_v61  ;;  %v1835_v24 = vpack.c.bf16 %v1824_v57, %v1824_v57  ;;  %v2002_v59 = vmul.f32 %v3916_v62, %v3563_v5 }
 0x299   : > { %1905 = vst [vmem:[#allocation3 + $0x98] sm:$0xff] %v3965_v0  ;;  %v2016_v19 = vpack.c.bf16 %v3972_v21, %v3968_v1  ;;  %v1936_v9 = vpack.c.bf16 %v3979_v4, %v3975_v12  ;;  %v2164_v3 = vpack.c.bf16 %v3995_v39, %v3991_v6  ;;  %v1999_v2 = vmul.f32 %v3894_v22, %v3563_v5  ;;  %v2588_v39 = vld [vmem:[%s4431_s4] sm:$0xff] }
 0x29a   : > { %v2001_v7 = vmul.f32 %v3900_v36, %v3559_v37  ;;  %v1998_v49 = vmul.f32 %v3879_v45, %v3559_v37  ;;  %v1830_v51 = vmul.f32 %v3944_v38, %v3385_v25 }
 0x29c   : > { %v1839_v61 = vpack.c.bf16 %v1830_v51, %v1830_v51 }
 0x29d   : > { %1772 = vrot.lane.b32.xlu0 %v1755_v18, %s3239_s22  ;;  %2094 = vrot.lane.b32.xlu1 %v3898_v10, %s3241_s24  ;;  %v1918_v10 = vmul.f32 %v3879_v45, %v3657_v63  ;;  %v2012_v18 = vpack.c.bf16 %v2002_v59, %v2001_v7 }
 0x29e   : > { %1862 = vrot.lane.b32.xlu2 %v1840_v35, %s3240_s23  ;;  %v2010_v35 = vpack.c.bf16 %v1999_v2, %v1998_v49 }
 0x29f   : > { %v1930_v53 = vpack.c.bf16 %v1919_v33, %v1918_v10  ;;  %v2005_v33 = vmul.f32 %v3944_v38, %v3563_v5  ;;  %v1747_v10 = vmul.f32 %v3916_v62, %v3395_v30  ;;  %v1602_v5 = vmul.f32 %v3944_v38, %v3418_v47 }
 0x2a1   : > { %v1757_v57 = vpack.c.bf16 %v1747_v10, %v1747_v10  ;;  %v1611_v59 = vpack.c.bf16 %v1602_v5, %v1602_v5  ;;  %v1605_v5 = vmul.f32 %v3957_v17, %v3418_v47 }
 0x2a5   : > { %1946 = vrot.lane.b32.xlu0 %v1930_v53, %s3233_s13  ;;  %1692 = vrot.lane.b32.xlu1 %v1675_v13, %s3238_s21  ;;  %v2004_v53 = vmul.f32 %v3923_v16, %v3559_v37  ;;  %v4072_v13 = vpop.permute.xlu2 %2096  ;;  %v1922_v37 = vmul.f32 %v3916_v62, %v3670_v8 }
 0x2a6   : > { %1782 = vrot.lane.b32.xlu2 %v1760_v56, %s3239_s22 }
 0x2a7   : > { %v2014_v56 = vpack.c.bf16 %v2005_v33, %v2004_v53  ;;  %v1924_v33 = vmul.f32 %v3923_v16, %v3657_v63 }
 0x2ad   : > { %2098 = vrot.lane.b32.xlu0 %v3921_v14, %s3241_s24  ;;  %1856 = vrot.lane.b32.xlu1 %v1837_v42, %s3240_s23  ;;  %v1677_v14 = vpack.c.bf16 %v3916_v62, %v3916_v62  ;;  %v1750_v42 = vmul.f32 %v3944_v38, %v3395_v30  ;;  %v4085_v49 = vpop.permute.xlu2 %2032 }
 0x2ae   : > { %1852 = vrot.lane.b32.xlu2 %v1835_v24, %s3240_s23  ;;  %v1921_v24 = vmul.f32 %v3900_v36, %v3657_v63  ;;  %v1679_v63 = vpack.c.bf16 %v3944_v38, %v3944_v38 }
 0x2af   : > { %v1759_v2 = vpack.c.bf16 %v1750_v42, %v1750_v42 }
 0x2b0   : > { %v1932_v7 = vpack.c.bf16 %v1922_v37, %v1921_v24  ;;  %v1613_v37 = vpack.c.bf16 %v1605_v5, %v1605_v5 }
 0x2b5   : > { %1696 = vrot.lane.b32.xlu0 %v1677_v14, %s3238_s21  ;;  %2030 = vrot.lane.b32.xlu1 %v2012_v18, %s3234_s14  ;;  %v1833_v14 = vmul.f32 %v3957_v17, %v3385_v25  ;;  %v1925_v18 = vmul.f32 %v3944_v38, %v3670_v8  ;;  %v4102_v53 = vpop.permute.xlu2 %1956  ;;  %v1753_v25 = vmul.f32 %v3957_v17, %v3395_v30  ;;  %v4106_v8 = vpop.permute.xlu0 %2104 }
 0x2b6   : > { %2026 = vrot.lane.b32.xlu2 %v2010_v35, %s3234_s14  ;;  %v4094_v35 = vpop.permute.xlu1 %2100  ;;  %v1681_v30 = vpack.c.bf16 %v3957_v17, %v3957_v17  ;;  %v1595_v38 = vmul.f32 %v3879_v45, %v3501_v43  ;;  %v1599_v45 = vmul.f32 %v3916_v62, %v3418_v47  ;;  %v1598_v17 = vmul.f32 %v3900_v36, %v3501_v43 }
 0x2b7   : > { %v1841_v51 = vpack.c.bf16 %v1833_v14, %v1833_v14  ;;  %v1934_v10 = vpack.c.bf16 %v1925_v18, %v1924_v33 }
 0x2b8   : > { %v1606_v42 = vpack.c.bf16 %v1595_v38, %v3514_v60  ;;  %v1609_v12 = vpack.c.bf16 %v1599_v45, %v1599_v45  ;;  %v1608_v4 = vpack.c.bf16 %v1598_v17, %v3514_v60 }
 0x2bd   : > { %2034 = vrot.lane.b32.xlu0 %v2014_v56, %s3234_s14  ;;  %1860 = vrot.lane.b32.xlu1 %v1839_v61, %s3240_s23  ;;  %v1761_v61 = vpack.c.bf16 %v1753_v25, %v1753_v25 }
 0x2be   : > { %1776 = vrot.lane.b32.xlu2 %v1757_v57, %s3239_s22  ;;  %v4108_v56 = vpop.permute.xlu1 %2036 }
 0x2c5   : > { %1632 = vrot.lane.b32.xlu0 %v1611_v59, %s3235_s15  ;;  %1780 = vrot.lane.b32.xlu1 %v1759_v2, %s3239_s22 }
 0x2c6   : > { %1950 = vrot.lane.b32.xlu2 %v1932_v7, %s3233_s13  ;;  %v4122_v57 = vpop.permute.xlu1 %1960  ;;  %v2111_v7 = vrot.slane %v4072_v13, 4 }
 0x2cd   : > { %1864 = vrot.lane.b32.xlu0 %v1841_v51, %s3240_s23  ;;  %1954 = vrot.lane.b32.xlu1 %v1934_v10, %s3233_s13 }
 0x2ce   : > { %2102 = vrot.lane.b32.xlu2 %v3953_v15, %s3241_s24  ;;  %v4120_v15 = vpop.permute.xlu0 %2040  ;;  %v4144_v1 = vpop.permute.xlu1 %1948 }
 0x2d5   : > { %1784 = vrot.lane.b32.xlu0 %v1761_v61, %s3239_s22  ;;  %2106 = vrot.lane.b32.xlu1 %v3965_v0, %s3241_s24 }
 0x2d6   : > { %1700 = vrot.lane.b32.xlu2 %v1679_v63, %s3238_s21 }
 0x2d7   : > { %v4116_v16 = vpop.permute.xlu2 %1770 }
 0x2d8   : > { %v1786_v14 = vrot.slane %v4116_v16, 4 }
 0x2dd   : > { %1952 = vrot.lane.b32.xlu0 %v3676_v20, %s3233_s13  ;;  %1704 = vrot.lane.b32.xlu1 %v1681_v30, %s3238_s21  ;;  %v2029_v20 = vpop.permute.xlu0 %2028 }
 0x2de   : > { %2038 = vrot.lane.b32.xlu2 %v2016_v19, %s3234_s14  ;;  %v1596_v19 = vmul.f32 %v3894_v22, %v3418_v47  ;;  %v2043_v10 = vrot.slane %v2029_v20, 4  ;;  %v1963_v20 = vrot.slane %v4144_v1, 4 }
 0x2e0   : > { %v4133_v0 = vpop.permute.xlu2 %1694 }
 0x2e5   : > { %1958 = vrot.lane.b32.xlu0 %v1936_v9, %s3233_s13  ;;  %1622 = vrot.lane.b32.xlu1 %v1606_v42, %s3235_s15  ;;  %v1607_v9 = vpack.c.bf16 %v1596_v19, %v1596_v19 }
 0x2e6   : > { %1636 = vrot.lane.b32.xlu2 %v1613_v37, %s3235_s15 }
 0x2e8   : > { %v4150_v21 = vpop.permute.xlu2 %1858 }
 0x2ed   : > { %1628 = vrot.lane.b32.xlu1 %v1609_v12, %s3235_s15  ;;  %1626 = vrot.lane.b32.xlu0 %v1608_v4, %s3235_s15  ;;  %v4158_v24 = vpop.permute.xlu0 %1690 }
 0x2ee   : > { %1624 = vrot.lane.b32.xlu2 %v1607_v9, %s3235_s15  ;;  %v1706_v45 = vrot.slane %v4158_v24, 4 }
 0x2ef   : > { %v1851_v62 = vpop.permute.xlu1 %1850 }
 0x2f0   : > { %v4160_v59 = vpop.permute.xlu2 %1630  ;;  %v1866_v28 = vrot.slane %v1851_v62, 4 }
 0x2f5   : > { %2186 = vrot.lane.b32.xlu1 %v2164_v3, %s3237_s20  ;;  %2184 = vrot.lane.b32.xlu0 %v3416_v44, %s3237_s20 }
 0x2f6   : > { %2182 = vrot.lane.b32.xlu2 %v2162_v41, %s3237_s20  ;;  %v2591_v41 = vld [vmem:[%s4431_s4 + $0x18] sm:$0xff] }
 0x2f7   : > { %v4172_v47 = vpop.permute.xlu0 %1854  ;;  %v1775_v43 = vpop.permute.xlu1 %1774 }
 0x2f8   : > { %v4174_v60 = vpop.permute.xlu2 %1862  ;;  %v1788_v4 = vrot.slane %v1775_v43, 4 }
 0x2fd   : > { %2176 = vrot.lane.b32.xlu1 %v3416_v44, %s3237_s20  ;;  %2174 = vrot.lane.b32.xlu0 %v2158_v54, %s3237_s20 }
 0x2fe   : > { %2188 = vrot.lane.b32.xlu2 %v3416_v44, %s3237_s20 }
 0x2ff   : > { %v4184_v22 = vpop.permute.xlu0 %1778  ;;  %v4186_v36 = vpop.permute.xlu1 %1698 }
 0x300   : > { %v4188_v6 = vpop.permute.xlu2 %1782 }
 0x305   : > { %2594 = vperm.xlu1 %3222, %v2588_v39   ;;  %2180 = vrot.lane.b32.xlu0 %v3416_v44, %s3237_s20  ;;  %v2590_v44 = vld [vmem:[%s4431_s4 + $0x10] sm:$0xff] }
 0x306   : > { %2178 = vrot.lane.b32.xlu2 %v2160_v26, %s3237_s20 }
 0x307   : > { %v4199_v50 = vpop.permute.xlu0 %1702  ;;  %v4201_v55 = vpop.permute.xlu1 %1634 }
 0x308   : > { %v1853_v23 = vpop.permute.xlu2 %1852 }
 0x309   : > { %v1867_v3 = vrot.slane %v1853_v23, 4 }
 0x30b   : > { %v1874_v54 = vsel %vm412_vm2, %v1866_v28, %v1867_v3 }
 0x30c   : > { %v1875_v40 = vsel %vm666_vm7, %v1851_v62, %v1874_v54  ;;  %v1868_v54 = vrot.slane %v4172_v47, 4 }
 0x30d   : > { %1886 = vst [vmem:[#allocation3 + $0x60] sm:$0xff] %v1875_v40  ;;  %2609 = vperm.xlu1 %3222, %v2591_v41   ;;  %2604 = vperm.xlu0 %3224, %v2590_v44   ;;  %v2113_v44 = vrot.slane %v4094_v35, 4  ;;  %v2045_v35 = vrot.slane %v4085_v49, 4 }
 0x30e   : > { %2599 = vperm.xlu2 %3223, %v2589_v11  }
 0x30f   : > { %v1773_v26 = vpop.permute.xlu0 %1772  ;;  %v2095_v2 = vpop.permute.xlu1 %2094 }
 0x310   : > { %v1787_v18 = vrot.slane %v1773_v26, 4  ;;  %v2027_v33 = vpop.permute.xlu2 %2026  ;;  %v2110_v51 = vrot.slane %v2095_v2, 4 }
 0x311   : > { %v2042_v25 = vrot.slane %v2027_v33, 4 }
 0x312   : > { %v1794_v61 = vsel %vm412_vm2, %v1786_v14, %v1787_v18  ;;  %v2118_v63 = vsel %vm412_vm2, %v2110_v51, %v2111_v7 }
 0x313   : > { %v1795_v30 = vsel %vm576_vm6, %v4116_v16, %v1794_v61  ;;  %v2050_v38 = vsel %vm412_vm2, %v2042_v25, %v2043_v10  ;;  %v2119_v5 = vsel %vm931_vm8, %v2095_v2, %v2118_v63  ;;  %v2115_v61 = vrot.slane %v4106_v8, 4 }
 0x314   : > { %1806 = vst [vmem:[#allocation3 + $0x40] sm:$0xff] %v1795_v30  ;;  %v2051_v13 = vsel %vm518_vm1, %v2027_v33, %v2050_v38  ;;  %v1708_v33 = vrot.slane %v4133_v0, 4  ;;  %v2047_v8 = vrot.slane %v4108_v56, 4 }
 0x315   : > { %2062 = vst [vmem:[#allocation3 + $0xc0] sm:$0xff] %v2051_v13 }
 0x316   : > { %2130 = vst [vmem:[#allocation3 + $0xe0] sm:$0xff] %v2119_v5 }
 0x317   : > { %v1947_v42 = vpop.permute.xlu0 %1946  ;;  %v1693_v37 = vpop.permute.xlu1 %1692 }
 0x318   : > { %v1962_v17 = vrot.slane %v1947_v42, 4  ;;  %v1777_v19 = vpop.permute.xlu2 %1776  ;;  %v1707_v12 = vrot.slane %v1693_v37, 4 }
 0x319   : > { %v1789_v16 = vrot.slane %v1777_v19, 4 }
 0x31a   : > { %v1970_v9 = vsel %vm412_vm2, %v1962_v17, %v1963_v20  ;;  %v1714_v62 = vsel %vm412_vm2, %v1706_v45, %v1707_v12  ;;  %v1870_v20 = vrot.slane %v4150_v21, 4 }
 0x31b   : > { %v1971_v39 = vsel %vm608_vm0, %v1947_v42, %v1970_v9  ;;  %v1796_v23 = vsel %vm412_vm2, %v1788_v4, %v1789_v16  ;;  %v1715_v28 = vsel %vm483_vm3, %v4158_v24, %v1714_v62 }
 0x31c   : > { %1982 = vst [vmem:[#allocation3 + $0xa0] sm:$0xff] %v1971_v39  ;;  %v1797_v1 = vsel %vm576_vm6, %v1775_v43, %v1796_v23 }
 0x31d   : > { %1807 = vst [vmem:[#allocation3 + $0x48] sm:$0xff] %v1797_v1  ;;  %v1642_v1 = vrot.slane %v4160_v59, 4 }
 0x31e   : > { %1726 = vst [vmem:[#allocation3 + $0x20] sm:$0xff] %v1715_v28 }
 0x31f   : > { %v2099_v3 = vpop.permute.xlu0 %2098  ;;  %v1857_v41 = vpop.permute.xlu1 %1856 }
 0x320   : > { %v2112_v11 = vrot.slane %v2099_v3, 4  ;;  %v4234_v40 = vpop.permute.xlu2 %1950  ;;  %v1869_v26 = vrot.slane %v1857_v41, 4 }
 0x322   : > { %v2120_v2 = vsel %vm412_vm2, %v2112_v11, %v2113_v44  ;;  %v1876_v7 = vsel %vm412_vm2, %v1868_v54, %v1869_v26  ;;  %v2049_v11 = vrot.slane %v4120_v15, 4 }
 0x323   : > { %v2121_v24 = vsel %vm931_vm8, %v2099_v3, %v2120_v2  ;;  %v1877_v43 = vsel %vm666_vm7, %v4172_v47, %v1876_v7  ;;  %v1790_v3 = vrot.slane %v4184_v22, 4 }
 0x324   : > { %2131 = vst [vmem:[#allocation3 + $0xe8] sm:$0xff] %v2121_v24 }
 0x325   : > { %1887 = vst [vmem:[#allocation3 + $0x68] sm:$0xff] %v1877_v43 }
 0x327   : > { %v1697_v14 = vpop.permute.xlu0 %1696  ;;  %v2031_v18 = vpop.permute.xlu1 %2030 }
 0x328   : > { %v1709_v51 = vrot.slane %v1697_v14, 4  ;;  %v2103_v10 = vpop.permute.xlu2 %2102  ;;  %v2044_v25 = vrot.slane %v2031_v18, 4 }
 0x329   : > { %v2114_v63 = vrot.slane %v2103_v10, 4 }
 0x32a   : > { %v1716_v30 = vsel %vm412_vm2, %v1708_v33, %v1709_v51  ;;  %v2052_v38 = vsel %vm412_vm2, %v2044_v25, %v2045_v35  ;;  %v1872_v35 = vrot.slane %v4174_v60, 4 }
 0x32b   : > { %v1717_v47 = vsel %vm483_vm3, %v4133_v0, %v1716_v30  ;;  %v2122_v5 = vsel %vm412_vm2, %v2114_v63, %v2115_v61  ;;  %v2053_v13 = vsel %vm518_vm1, %v2031_v18, %v2052_v38  ;;  %v1710_v0 = vrot.slane %v4186_v36, 4 }
 0x32c   : > { %1727 = vst [vmem:[#allocation3 + $0x28] sm:$0xff] %v1717_v47  ;;  %v2123_v49 = vsel %vm931_vm8, %v2103_v10, %v2122_v5  ;;  %v1967_v18 = vrot.slane %v4102_v53, 4 }
 0x32d   : > { %2132 = vst [vmem:[#allocation3 + $0xf0] sm:$0xff] %v2123_v49  ;;  %v1792_v49 = vrot.slane %v4188_v6, 4 }
 0x32e   : > { %2063 = vst [vmem:[#allocation3 + $0xc8] sm:$0xff] %v2053_v13  ;;  %v2117_v13 = vrot.slane %v4053_v27, 4  ;;  %v1712_v27 = vrot.slane %v4199_v50, 4 }
 0x32f   : > { %v2035_v42 = vpop.permute.xlu0 %2034  ;;  %v1861_v37 = vpop.permute.xlu1 %1860 }
 0x330   : > { %v2046_v45 = vrot.slane %v2035_v42, 4  ;;  %v1701_v17 = vpop.permute.xlu2 %1700  ;;  %v1871_v19 = vrot.slane %v1861_v37, 4 }
 0x331   : > { %v1711_v12 = vrot.slane %v1701_v17, 4 }
 0x332   : > { %v2054_v4 = vsel %vm412_vm2, %v2046_v45, %v2047_v8  ;;  %v1878_v16 = vsel %vm412_vm2, %v1870_v20, %v1871_v19 }
 0x333   : > { %v2055_v9 = vsel %vm518_vm1, %v2035_v42, %v2054_v4  ;;  %v1718_v62 = vsel %vm412_vm2, %v1710_v0, %v1711_v12  ;;  %v1879_v39 = vsel %vm666_vm7, %v4150_v21, %v1878_v16  ;;  %v3178_v0 = vld [vmem:[#allocation3 + $0x64] sm:$0xf0]  ;;  %v3009_v16 = vld [vmem:[#allocation3 + $0x60] sm:$0xf] }
 0x334   : > { %2064 = vst [vmem:[#allocation3 + $0xd0] sm:$0xff] %v2055_v9  ;;  %v1719_v56 = vsel %vm483_vm3, %v4186_v36, %v1718_v62  ;;  %v1964_v9 = vrot.slane %v4234_v40, 4 }
 0x335   : > { %1728 = vst [vmem:[#allocation3 + $0x30] sm:$0xff] %v1719_v56  ;;  %v3010_v56 = vor.u32 %v3178_v0, %v3009_v16  ;;  %v3059_v0 = vld [vmem:[#allocation3 + $0xc8] sm:$0xf0]  ;;  %v3057_v16 = vld [vmem:[#allocation3 + $0xc0] sm:$0xf] }
 0x336   : > { %1888 = vst [vmem:[#allocation3 + $0x70] sm:$0xff] %v1879_v39 }
 0x337   : > { %v1633_v23 = vpop.permute.xlu0 %1632  ;;  %v1781_v28 = vpop.permute.xlu1 %1780 }
 0x338   : > { %v1643_v41 = vrot.slane %v1633_v23, 4  ;;  %v2039_v44 = vpop.permute.xlu2 %2038  ;;  %v1791_v54 = vrot.slane %v1781_v28, 4 }
 0x339   : > { %v2048_v26 = vrot.slane %v2039_v44, 4 }
 0x33a   : > { %v1650_v21 = vsel %vm412_vm2, %v1642_v1, %v1643_v41  ;;  %v1798_v2 = vsel %vm412_vm2, %v1790_v3, %v1791_v54  ;;  %v3081_v1 = vld [vmem:[#allocation3 + $0xf0] sm:$0xf] }
 0x33b   : > { %v1651_v36 = vsel %vm414_vm4, %v4160_v59, %v1650_v21  ;;  %v2056_v7 = vsel %vm412_vm2, %v2048_v26, %v2049_v11  ;;  %v1799_v24 = vsel %vm576_vm6, %v4184_v22, %v1798_v2  ;;  %v1644_v59 = vrot.slane %v4201_v55, 4  ;;  %v3195_v11 = vld [vmem:[#allocation3 + $0xf4] sm:$0xf] }
 0x33c   : > { %1660 = vst [vmem:[#allocation3 + $0x10] sm:$0xff] %v1651_v36  ;;  %v2057_v43 = vsel %vm518_vm1, %v2039_v44, %v2056_v7 }
 0x33d   : > { %2065 = vst [vmem:[#allocation3 + $0xd8] sm:$0xff] %v2057_v43  ;;  %v3194_v43 = vld [vmem:[#allocation3 + $0xe4] sm:$0xf0] }
 0x33e   : > { %1808 = vst [vmem:[#allocation3 + $0x50] sm:$0xff] %v1799_v24  ;;  %v3174_v24 = vld [vmem:[#allocation3 + $0x44] sm:$0xf0] }
 0x33f   : > { %v1865_v14 = vpop.permute.xlu0 %1864  ;;  %v1955_v15 = vpop.permute.xlu1 %1954 }
 0x340   : > { %v1873_v33 = vrot.slane %v1865_v14, 4  ;;  %v1637_v51 = vpop.permute.xlu2 %1636  ;;  %v1966_v10 = vrot.slane %v1955_v15, 4  ;;  %v3075_v14 = vld [vmem:[#allocation3 + $0xe8] sm:$0xf0] }
 0x341   : > { %v1645_v25 = vrot.slane %v1637_v51, 4 }
 0x342   : > { %v1880_v61 = vsel %vm412_vm2, %v1872_v35, %v1873_v33  ;;  %v1974_v22 = vsel %vm412_vm2, %v1966_v10, %v1967_v18  ;;  %v2993_v18 = vld [vmem:[#allocation3 + $0x40] sm:$0xf] }
 0x343   : > { %v1881_v63 = vsel %vm666_vm7, %v4174_v60, %v1880_v61  ;;  %v1652_v30 = vsel %vm412_vm2, %v1644_v59, %v1645_v25  ;;  %v1975_v38 = vsel %vm608_vm0, %v1955_v15, %v1974_v22  ;;  %v1969_v15 = vrot.slane %v4122_v57, 4  ;;  %v3073_v35 = vld [vmem:[#allocation3 + $0xe0] sm:$0xf]  ;;  %v3193_v25 = vld [vmem:[#allocation3 + $0xe4] sm:$0xf] }
 0x344   : > { %1889 = vst [vmem:[#allocation3 + $0x78] sm:$0xff] %v1881_v63  ;;  %v1653_v53 = vsel %vm414_vm4, %v4201_v55, %v1652_v30  ;;  %v3017_v55 = vld [vmem:[#allocation3 + $0x70] sm:$0xf]  ;;  %v2994_v59 = vor.u32 %v3174_v24, %v2993_v18  ;;  %v3074_v61 = vor.u32 %v3194_v43, %v3073_v35  ;;  %v3078_v22 = vor.u32 %v3193_v25, %v3075_v14  ;;  %v3041_v18 = vld [vmem:[#allocation3 + $0xa0] sm:$0xf] }
 0x345   : > { %1661 = vst [vmem:[#allocation3 + $0x18] sm:$0xff] %v1653_v53  ;;  %v3001_v44 = vld [vmem:[#allocation3 + $0x50] sm:$0xf]  ;;  %v3184_v25 = vld [vmem:[#allocation3 + $0x94] sm:$0xf0] }
 0x346   : > { %1984 = vst [vmem:[#allocation3 + $0xb0] sm:$0xff] %v1975_v38  ;;  %v3192_v38 = vld [vmem:[#allocation3 + $0xd4] sm:$0xf0] }
 0x347   : > { %v1785_v47 = vpop.permute.xlu0 %1784  ;;  %v2107_v5 = vpop.permute.xlu1 %2106 }
 0x348   : > { %v1793_v42 = vrot.slane %v1785_v47, 4  ;;  %v2116_v37 = vrot.slane %v2107_v5, 4 }
 0x34a   : > { %v1800_v60 = vsel %vm412_vm2, %v1792_v49, %v1793_v42  ;;  %v2124_v8 = vsel %vm412_vm2, %v2116_v37, %v2117_v13  ;;  %v3067_v13 = vld [vmem:[#allocation3 + $0xd8] sm:$0xf0]  ;;  %v2985_v49 = vld [vmem:[#allocation3 + $0x30] sm:$0xf] }
 0x34b   : > { %v1801_v20 = vsel %vm576_vm6, %v4188_v6, %v1800_v60  ;;  %v2125_v45 = vsel %vm931_vm8, %v2107_v5, %v2124_v8  ;;  %v3180_v17 = vld [vmem:[#allocation3 + $0x74] sm:$0xf0]  ;;  %v1625_v6 = vpop.permute.xlu2 %1624  ;;  %v3065_v5 = vld [vmem:[#allocation3 + $0xd0] sm:$0xf]  ;;  %v3191_v8 = vld [vmem:[#allocation3 + $0xd4] sm:$0xf] }
 0x34c   : > { %1809 = vst [vmem:[#allocation3 + $0x58] sm:$0xff] %v1801_v20  ;;  %v3018_v19 = vor.u32 %v3180_v17, %v3017_v55  ;;  %v1639_v33 = vrot.slane %v1625_v6, 4  ;;  %v3066_v60 = vor.u32 %v3192_v38, %v3065_v5  ;;  %v3070_v20 = vor.u32 %v3191_v8, %v3067_v13  ;;  %v3190_v55 = vld [vmem:[#allocation3 + $0xc4] sm:$0xf0]  ;;  %v3033_v13 = vld [vmem:[#allocation3 + $0x90] sm:$0xf] }
 0x34d   : > { %2133 = vst [vmem:[#allocation3 + $0xf8] sm:$0xff] %v2125_v45  ;;  %v3170_v45 = vld [vmem:[#allocation3 + $0x24] sm:$0xf0] }
 0x34e   : > { %2474 = vmatpush.bf16.msrb.mxu1 %v3018_v19  ;;  %v3182_v8 = vld [vmem:[#allocation3 + $0x84] sm:$0xf0] }
 0x34f   : > { %v1953_v12 = vpop.permute.xlu0 %1952  ;;  %v1705_v4 = vpop.permute.xlu1 %1704 }
 0x350   : > { %v1965_v62 = vrot.slane %v1953_v12, 4  ;;  %v1713_v39 = vrot.slane %v1705_v4, 4  ;;  %v2977_v4 = vld [vmem:[#allocation3 + $0x20] sm:$0xf] }
 0x352   : > { %v1972_v23 = vsel %vm412_vm2, %v1964_v9, %v1965_v62  ;;  %v1720_v28 = vsel %vm412_vm2, %v1712_v27, %v1713_v39  ;;  %2475 = vmatpush.bf16.msrb.mxu1 %v3010_v56  ;;  %v2978_v9 = vor.u32 %v3170_v45, %v2977_v4  ;;  %v3058_v62 = vor.u32 %v3190_v55, %v3057_v16  ;;  %v3189_v39 = vld [vmem:[#allocation3 + $0xc4] sm:$0xf]  ;;  %v3019_v55 = vld [vmem:[#allocation3 + $0x78] sm:$0xf0] }
 0x353   : > { %v1973_v3 = vsel %vm608_vm0, %v4234_v40, %v1972_v23  ;;  %v1721_v41 = vsel %vm483_vm3, %v4199_v50, %v1720_v28  ;;  %v3176_v54 = vld [vmem:[#allocation3 + $0x54] sm:$0xf0]  ;;  %v4302_v57 = vpop.permute.xlu2 %2182  ;;  %v3062_v6 = vor.u32 %v3189_v39, %v3059_v0  ;;  %v3049_v28 = vld [vmem:[#allocation3 + $0xb0] sm:$0xf]  ;;  %v3181_v16 = vld [vmem:[#allocation3 + $0x84] sm:$0xf] }
 0x354   : > { %1983 = vst [vmem:[#allocation3 + $0xa8] sm:$0xff] %v1973_v3  ;;  %v3002_v26 = vor.u32 %v3176_v54, %v3001_v44  ;;  %v3196_v21 = vld [vmem:[#allocation3 + $0xf4] sm:$0xf0]  ;;  %v3083_v2 = vld [vmem:[#allocation3 + $0xf8] sm:$0xf0]  ;;  %v2194_v14 = vrot.slane %v4302_v57, 4 }
 0x355   : > { %1729 = vst [vmem:[#allocation3 + $0x38] sm:$0xff] %v1721_v41  ;;  %v3082_v36 = vor.u32 %v3196_v21, %v3081_v1  ;;  %v3086_v7 = vor.u32 %v3195_v11, %v3083_v2  ;;  %v3168_v23 = vld [vmem:[#allocation3 + $0x14] sm:$0xf0]  ;;  %v3187_v41 = vld [vmem:[#allocation3 + $0xb4] sm:$0xf] }
 0x356   : > { %2476 = vmatpush.bf16.msrb.mxu1 %v3002_v26  ;;  %v2969_v54 = vld [vmem:[#allocation3 + $0x10] sm:$0xf] }
 0x357   : > { %2493 = vmatpush.bf16.msrb.mxu3 %v3082_v36  ;;  %2550 = vmatpush.bf16.msra.mxu2 %v3086_v7  ;;  %v1959_v40 = vpop.permute.xlu0 %1958  ;;  %v1623_v50 = vpop.permute.xlu1 %1622  ;;  %v2970_v2 = vor.u32 %v3168_v23, %v2969_v54 }
 0x358   : > { %v1968_v51 = vrot.slane %v1959_v40, 4  ;;  %v1638_v10 = vrot.slane %v1623_v50, 4 }
 0x35a   : > { %v1976_v63 = vsel %vm412_vm2, %v1968_v51, %v1969_v15  ;;  %v1646_v30 = vsel %vm412_vm2, %v1638_v10, %v1639_v33  ;;  %2477 = vmatpush.bf16.msrb.mxu1 %v2994_v59  ;;  %v3185_v33 = vld [vmem:[#allocation3 + $0xa4] sm:$0xf] }
 0x35b   : > { %v1977_v53 = vsel %vm608_vm0, %v1959_v40, %v1976_v63  ;;  %v1647_v47 = vsel %vm414_vm4, %v1623_v50, %v1646_v30  ;;  %2494 = vmatpush.bf16.msrb.mxu3 %v3074_v61  ;;  %2551 = vmatpush.bf16.msra.mxu2 %v3078_v22  ;;  %v2189_v21 = vpop.permute.xlu2 %2188  ;;  %v3186_v36 = vld [vmem:[#allocation3 + $0xa4] sm:$0xf0]  ;;  %v3043_v43 = vld [vmem:[#allocation3 + $0xa8] sm:$0xf0]  ;;  %v2937_v61 = vld [vmem:[%s4429_s2] sm:$0xf] }
 0x35c   : > { %1985 = vst [vmem:[#allocation3 + $0xb8] sm:$0xff] %v1977_v53  ;;  %v3172_v42 = vld [vmem:[#allocation3 + $0x34] sm:$0xf0]  ;;  %v2197_v15 = vrot.slane %v2189_v21, 4  ;;  %v3042_v35 = vor.u32 %v3186_v36, %v3041_v18  ;;  %v3046_v59 = vor.u32 %v3185_v33, %v3043_v43  ;;  %v3160_v22 = vld [vmem:[%s4429_s2 + $0x8] sm:$0xf0] }
 0x35d   : > { %1658 = vst [vmem:[#allocation3] sm:$0xff] %v1647_v47  ;;  %v2986_v37 = vor.u32 %v3172_v42, %v2985_v49  ;;  %v3035_v47 = vld [vmem:[#allocation3 + $0x98] sm:$0xf0]  ;;  %v3034_v49 = vor.u32 %v3184_v25, %v3033_v13  ;;  %v3183_v42 = vld [vmem:[#allocation3 + $0x94] sm:$0xf] }
 0x35e   : > { %v3177_v21 = vld [vmem:[#allocation3 + $0x64] sm:$0xf]  ;;  %v2995_v33 = vld [vmem:[#allocation3 + $0x48] sm:$0xf0]  ;;  %v2987_v25 = vld [vmem:[#allocation3 + $0x38] sm:$0xf0] }
 0x35f   : > { %2478 = vmatpush.bf16.msrb.mxu1 %v2986_v37  ;;  %2495 = vmatpush.bf16.msrb.mxu3 %v3066_v60  ;;  %v1627_v17 = vpop.permute.xlu0 %1626  ;;  %v1629_v19 = vpop.permute.xlu1 %1628  ;;  %v4320_v37 = vor.u32 %v3160_v22, %v2937_v61  ;;  %v3038_v60 = vor.u32 %v3183_v42, %v3035_v47  ;;  %v3163_v18 = vld [vmem:[%s4429_s2 + $0x20] sm:$0xf0]  ;;  %v3162_v61 = vld [vmem:[%s4429_s2 + $0x1c] sm:$0xf]  ;;  %v2951_v22 = vld [vmem:[%s4429_s2 + $0x24] sm:$0xf0] }
 0x360   : > { %2552 = vmatpush.bf16.msra.mxu2 %v3070_v20  ;;  %v1640_v27 = vrot.slane %v1627_v17, 4  ;;  %v1641_v12 = vrot.slane %v1629_v19, 4  ;;  %v3027_v20 = vld [vmem:[#allocation3 + $0x88] sm:$0xf0]  ;;  %v2939_v19 = vld [vmem:[%s4429_s2 + $0xc] sm:$0xf0] }
 0x361   : > { %v3030_v39 = vor.u32 %v3181_v16, %v3027_v20  ;;  %v2979_v47 = vld [vmem:[#allocation3 + $0x28] sm:$0xf0]  ;;  %v2945_v20 = vld [vmem:[%s4429_s2 + $0x8] sm:$0xf]  ;;  %v2957_v16 = vld [vmem:[%s4429_s2 + $0x20] sm:$0xf] }
 0x362   : > { %v1648_v56 = vsel %vm412_vm2, %v1640_v27, %v1641_v12  ;;  %v3025_v12 = vld [vmem:[#allocation3 + $0x80] sm:$0xf] }
 0x363   : > { %v1649_v1 = vsel %vm414_vm4, %v1627_v17, %v1648_v56  ;;  %2479 = vmatpush.bf16.msrb.mxu1 %v2978_v9  ;;  %2496 = vmatpush.bf16.msrb.mxu3 %v3058_v62  ;;  %v3188_v3 = vld [vmem:[#allocation3 + $0xb4] sm:$0xf0]  ;;  %v3051_v44 = vld [vmem:[#allocation3 + $0xb8] sm:$0xf0]  ;;  %v3159_v17 = vld [vmem:[%s4429_s2 + $0x4] sm:$0xf]  ;;  %v3026_v4 = vor.u32 %v3182_v8, %v3025_v12  ;;  %v2179_v54 = vpop.permute.xlu2 %2178 }
 0x364   : > { %1659 = vst [vmem:[#allocation3 + $0x8] sm:$0xff] %v1649_v1  ;;  %2553 = vmatpush.bf16.msra.mxu2 %v3062_v6  ;;  %v3050_v11 = vor.u32 %v3188_v3, %v3049_v28  ;;  %v3054_v26 = vor.u32 %v3187_v41, %v3051_v44  ;;  %v2961_v38 = vld [vmem:[#allocation3] sm:$0xf]  ;;  %v3179_v9 = vld [vmem:[#allocation3 + $0x74] sm:$0xf]  ;;  %v2942_v6 = vor.u32 %v3159_v17, %v2939_v19 }
 0x365   : > { %v3022_v56 = vor.u32 %v3179_v9, %v3019_v55  ;;  %v3011_v3 = vld [vmem:[#allocation3 + $0x68] sm:$0xf0]  ;;  %v3169_v8 = vld [vmem:[#allocation3 + $0x24] sm:$0xf]  ;;  %v2971_v55 = vld [vmem:[#allocation3 + $0x18] sm:$0xf0] }
 0x366   : > { %v3167_v19 = vld [vmem:[#allocation3 + $0x14] sm:$0xf]  ;;  %v3165_v12 = vld [vmem:[#allocation3 + $0x4] sm:$0xf]  ;;  %v3164_v9 = vld [vmem:[%s4429_s2 + $0x28] sm:$0xf0] }
 0x367   : > { %2480 = vmatpush.bf16.msrb.mxu1 %v2970_v2  ;;  %2497 = vmatpush.bf16.msrb.mxu3 %v3050_v11  ;;  %v2185_v7 = vpop.permute.xlu0 %2184  ;;  %v2187_v24 = vpop.permute.xlu1 %2186  ;;  %v3014_v2 = vor.u32 %v3177_v21, %v3011_v3 }
 0x368   : > { %2554 = vmatpush.bf16.msra.mxu2 %v3054_v26  ;;  %v2195_v40 = vrot.slane %v2185_v7, 4  ;;  %v2196_v50 = vrot.slane %v2187_v24, 4  ;;  %v3003_v7 = vld [vmem:[#allocation3 + $0x58] sm:$0xf0] }
 0x36a   : > { %v2202_v51 = vsel %vm412_vm2, %v2194_v14, %v2195_v40  ;;  %v2204_v10 = vsel %vm412_vm2, %v2196_v50, %v2197_v15  ;;  %v3175_v14 = vld [vmem:[#allocation3 + $0x54] sm:$0xf]  ;;  %v2949_v50 = vld [vmem:[%s4429_s2 + $0x18] sm:$0xf] }
 0x36b   : > { %v2203_v63 = vsel %vm355_vm5, %v4302_v57, %v2202_v51  ;;  %v2205_v30 = vsel %vm355_vm5, %v2187_v24, %v2204_v10  ;;  %2498 = vmatpush.bf16.msrb.mxu3 %v3042_v35  ;;  %v3166_v53 = vld [vmem:[#allocation3 + $0x4] sm:$0xf0]  ;;  %v2192_v24 = vrot.slane %v2179_v54, 4  ;;  %v3006_v40 = vor.u32 %v3175_v14, %v3003_v7  ;;  %v3173_v51 = vld [vmem:[#allocation3 + $0x44] sm:$0xf] }
 0x36c   : > { %2212 = vst [vmem:[#allocation3 + $0x110] sm:$0xff] %v2203_v63  ;;  %2555 = vmatpush.bf16.msra.mxu2 %v3046_v59  ;;  %v2962_v5 = vor.u32 %v3166_v53, %v2961_v38  ;;  %v2950_v10 = vor.u32 %v3163_v18, %v2949_v50  ;;  %v2998_v59 = vor.u32 %v3173_v51, %v2995_v33  ;;  %v3171_v63 = vld [vmem:[#allocation3 + $0x34] sm:$0xf] }
 0x36d   : > { %2213 = vst [vmem:[#allocation3 + $0x118] sm:$0xff] %v2205_v30  ;;  %v2990_v30 = vor.u32 %v3171_v63, %v2987_v25  ;;  %v2954_v38 = vor.u32 %v3162_v61, %v2951_v22  ;;  %v2620_v61 = vld [vmem:[%s3331_s19] sm:$0xff] }
 0x36e   : > { %2481 = vmatpush.bf16.msrb.mxu1 %v2962_v5 }
 0x36f   : > { %2499 = vmatpush.bf16.msrb.mxu3 %v3034_v49  ;;  %v2175_v57 = vpop.permute.xlu0 %2174  ;;  %v2177_v45 = vpop.permute.xlu1 %2176 }
 0x370   : > { %2556 = vmatpush.bf16.msra.mxu2 %v3038_v60  ;;  %v2190_v0 = vrot.slane %v2175_v57, 4  ;;  %v2191_v27 = vrot.slane %v2177_v45, 4  ;;  %v2982_v45 = vor.u32 %v3169_v8, %v2979_v47  ;;  %v2600_v8 = vpop.permute.xlu2 %2599 }
 0x371   : > { %2482 = vmatmul.bf16.vlgmr.msrb.gmra.mxu1 %v4320_v37 }
 0x372   : > { %v2198_v62 = vsel %vm412_vm2, %v2190_v0, %v2191_v27  ;;  %v2974_v0 = vor.u32 %v3167_v19, %v2971_v55  ;;  %v2963_v27 = vld [vmem:[#allocation3 + $0x8] sm:$0xf0] }
 0x373   : > { %v2199_v23 = vsel %vm355_vm5, %v2175_v57, %v2198_v62  ;;  %2500 = vmatpush.bf16.msrb.mxu3 %v3026_v4  ;;  %v3097_v28 = vld [vmem:[#allocation3 + $0x110] sm:$0xf]  ;;  %v3199_v1 = vld [vmem:[#allocation3 + $0x114] sm:$0xf]  ;;  %v2966_v4 = vor.u32 %v3165_v12, %v2963_v27  ;;  %v2958_v62 = vor.u32 %v3164_v9, %v2957_v16 }
 0x374   : > { %2210 = vst [vmem:[#allocation3 + $0x100] sm:$0xff] %v2199_v23  ;;  %2557 = vmatpush.bf16.msra.mxu2 %v3030_v39  ;;  %v3200_v41 = vld [vmem:[#allocation3 + $0x114] sm:$0xf0]  ;;  %v3099_v44 = vld [vmem:[#allocation3 + $0x118] sm:$0xf0]  ;;  %v1390_v39 = vpop.f32.mrf.mxu1 }
 0x375   : > { %v3098_v11 = vor.u32 %v3200_v41, %v3097_v28  ;;  %v3102_v26 = vor.u32 %v3199_v1, %v3099_v44  ;;  %v3161_v57 = vld [vmem:[%s4429_s2 + $0x10] sm:$0xf0]  ;;  %v1477_v41 = vpop.f32.mrf.mxu2 }
 0x376   : > { %2501 = vmatmul.bf16.vlgmr.msrb.gmra.mxu3 %v2942_v6  ;;  %v2946_v17 = vor.u32 %v3161_v57, %v2945_v20  ;;  %v2622_v57 = vld [vmem:[%s3331_s19 + $0x10] sm:$0xff] }
 0x377   : > { %2531 = vmatpush.bf16.msra.mxu3 %v3022_v56  ;;  %2518 = vmatpush.bf16.msra.mxu1 %v3098_v11  ;;  %v2181_v36 = vpop.permute.xlu0 %2180  ;;  %v2595_v25 = vpop.permute.xlu1 %2594 }
 0x378   : > { %2575 = vmatpush.bf16.msra.mxu0 %v3102_v26  ;;  %v2193_v43 = vrot.slane %v2181_v36, 4  ;;  %2558 = vmatmul.bf16.vlgmr.msra.gmra.mxu2 %v2942_v6  ;;  %v1448_v6 = vpop.f32.mrf.mxu3 }
 0x37a   : > { %v2200_v15 = vsel %vm412_vm2, %v2192_v24, %v2193_v43  ;;  %v1391_v43 = vadd.f32 %v1390_v39, %v3858_v46 }
 0x37b   : > { %2532 = vmatpush.bf16.msra.mxu3 %v3014_v2  ;;  %v2201_v35 = vsel %vm355_vm5, %v2179_v54, %v2200_v15  ;;  %v3089_v53 = vld [vmem:[#allocation3 + $0x100] sm:$0xf]  ;;  %v3197_v13 = vld [vmem:[#allocation3 + $0x104] sm:$0xf]  ;;  %v1506_v54 = vpop.f32.mrf.mxu0 }
 0x37c   : > { %2211 = vst [vmem:[#allocation3 + $0x108] sm:$0xff] %v2201_v35  ;;  %v1392_v56 = vpop.f32.mrf.mxu1 }
 0x37d   : > { %v1479_v21 = vpop.f32.mrf.mxu2  ;;  %v1393_v35 = vadd.f32 %v1392_v56, %v3862_v52  ;;  %v1478_v52 = vadd.f32 %v1477_v41, %v1448_v6  ;;  %v2621_v6 = vld [vmem:[%s3331_s19 + $0x8] sm:$0xff] }
 0x37f   : > { %2533 = vmatpush.bf16.msra.mxu3 %v3006_v40  ;;  %v1420_v40 = vadd.f32 %v3860_v48, %v1391_v43  ;;  %v1422_v46 = vadd.f32 %v3864_v29, %v1393_v35  ;;  %v4381_v48 = vstv %s2636_s26  ;;  %v1507_v20 = vadd.f32 %v1506_v54, %v1478_v52 }
 0x380   : > { %v1450_v28 = vpop.f32.mrf.mxu3 }
 0x381   : > { %2487 = vmatmul.bf16.gmra.mxu1 %v2950_v10  ;;  %v1480_v12 = vadd.f32 %v1479_v21, %v1450_v28 }
 0x383   : > { %2534 = vmatpush.bf16.msra.mxu3 %v2998_v59  ;;  %v3198_v5 = vld [vmem:[#allocation3 + $0x104] sm:$0xf0]  ;;  %v3091_v49 = vld [vmem:[#allocation3 + $0x108] sm:$0xf0]  ;;  %v1508_v2 = vpop.f32.mrf.mxu0 }
 0x384   : > { %v3090_v42 = vor.u32 %v3198_v5, %v3089_v53  ;;  %v3094_v60 = vor.u32 %v3197_v13, %v3091_v49  ;;  %v1395_v23 = vpop.f32.mrf.mxu1  ;;  %v1509_v41 = vadd.f32 %v1508_v2, %v1480_v12 }
 0x385   : > { %v4366_v24 = vpop.f32.mrf.mxu2  ;;  %v1396_v47 = vadd.f32 %v1395_v23, %v3866_v31 }
 0x386   : > { %2506 = vmatmul.bf16.gmra.mxu3 %v2954_v38  ;;  %2519 = vmatpush.bf16.msra.mxu1 %v3090_v42 }
 0x387   : > { %2535 = vmatpush.bf16.msra.mxu3 %v2990_v30  ;;  %2576 = vmatpush.bf16.msra.mxu0 %v3094_v60  ;;  %v1425_v31 = vadd.f32 %v3868_v32, %v1396_v47 }
 0x388   : > { %2563 = vmatmul.bf16.gmra.mxu2 %v2954_v38  ;;  %v4362_v1 = vpop.f32.mrf.mxu3 }
 0x38a   : > { %3201 = vmatpush.bf16.msrb.mxu1 %v3102_v26  ;;  %3105 = vmatmul.msk.bf16.vlgmr.msra.gmra.mxu0 %vm1329_vm9, %v2946_v17 }
 0x38b   : > { %2536 = vmatpush.bf16.msra.mxu3 %v2982_v45  ;;  %v4371_v15 = vpop.f32.mrf.mxu0 }
 0x38d   : > { %v4375_v51 = vpop.f32.mrf.mxu2 }
 0x38e   : > { %3202 = vmatpush.bf16.msrb.mxu1 %v3094_v60 }
 0x38f   : > { %2537 = vmatpush.bf16.msra.mxu3 %v2974_v0 }
 0x390   : > { %v4364_v44 = vpop.f32.mrf.mxu3 }
 0x391   : > { %3103 = vmatmul.msk.bf16.vlgmr.msra.gmra.mxu1 %vm1329_vm9, %v2946_v17 }
 0x393   : > { %2538 = vmatpush.bf16.msra.mxu3 %v2966_v4  ;;  %v4379_v22 = vpop.f32.mrf.mxu0 }
 0x396   : > { %2539 = vmatmul.bf16.vlgmr.msra.gmra.mxu3 %v4320_v37  ;;  %v1397_v37 = vpop.f32.mrf.mxu1 }
 0x397   : > { %v1398_v16 = vadd.f32 %v1397_v37, %v3870_v58 }
 0x399   : > { %v1427_v28 = vadd.f32 %v3872_v34, %v1398_v16  ;;  %v2627_v16 = vld [vmem:[%s3331_s19 + $0x38] sm:$0xff] }
 0x3a1   : > { %3104 = vmatmul.msk.bf16.gmra.mxu1 %vm1329_vm9, %v2958_v62 }
 0x3a6   : > { %2544 = vmatmul.bf16.gmra.mxu3 %v2950_v10 }
 0x3b1   : > { %3106 = vmatmul.msk.bf16.vlgmr.msrb.gmra.mxu1 %vm1329_vm9, %v2958_v62 }
 0x3ee   : > { %v2483_v3 = vpop.f32.mrf.mxu1 }
 0x3ef   : > { %v2484_v18 = vadd.f32 %v2483_v3, %v1420_v40  ;;  %v2605_v3 = vpop.permute.xlu0 %2604 }
 0x3f6   : > { %v2485_v11 = vpop.f32.mrf.mxu1 }
 0x3f7   : > { %v2486_v38 = vadd.f32 %v2485_v11, %v1422_v46  ;;  %v2624_v11 = vld [vmem:[%s3331_s19 + $0x20] sm:$0xff]  ;;  %v2610_v46 = vpop.permute.xlu1 %2609 }
 0x3f9   : > { %v2502_v26 = vpop.f32.mrf.mxu3 }
 0x3fa   : > { %v2503_v33 = vadd.f32 %v2502_v26, %v2484_v18 }
 0x3fb   : > { %v2559_v49 = vpop.f32.mrf.mxu2 }
 0x3fe   : > { %v2488_v36 = vpop.f32.mrf.mxu1 }
 0x3ff   : > { %v2489_v0 = vadd.f32 %v2488_v36, %v1425_v31  ;;  %v2625_v31 = vld [vmem:[%s3331_s19 + $0x28] sm:$0xff] }
 0x401   : > { %v2504_v7 = vpop.f32.mrf.mxu3 }
 0x402   : > { %v2505_v5 = vadd.f32 %v2504_v7, %v2486_v38 }
 0x403   : > { %v2561_v26 = vpop.f32.mrf.mxu2 }
 0x406   : > { %v4369_v14 = vpop.f32.mrf.mxu1 }
 0x407   : > { %v2578_v17 = vpop.f32.mrf.mxu0  ;;  %v2491_v7 = vadd.f32 %v4369_v14, %v1427_v28 }
 0x409   : > { %v2507_v50 = vpop.f32.mrf.mxu3 }
 0x40a   : > { %v2508_v9 = vadd.f32 %v2507_v50, %v2489_v0  ;;  %v1483_v50 = vadd.f32 %v4366_v24, %v4362_v1 }
 0x40b   : > { %v2564_v47 = vpop.f32.mrf.mxu2 }
 0x40c   : > { %v1512_v1 = vadd.f32 %v4371_v15, %v1483_v50 }
 0x40e   : > { %v2521_v10 = vpop.f32.mrf.mxu1 }
 0x40f   : > { %v2522_v59 = vadd.f32 %v2521_v10, %v2503_v33  ;;  %v2580_v40 = vpop.f32.mrf.mxu0 }
 0x411   : > { %v2612_v63 = vadd.f32 %v2595_v25, %v2522_v59  ;;  %v2509_v30 = vpop.f32.mrf.mxu3 }
 0x412   : > { %v2510_v34 = vadd.f32 %v2509_v30, %v2491_v7 }
 0x413   : > { %v2628_v53 = vadd.f32 %v2620_v61, %v2612_v63  ;;  %v2626_v63 = vld [vmem:[%s3331_s19 + $0x30] sm:$0xff] }
 0x415   : > { %vm2637_vm0 = vcmp.gt.f32.partialorder %v2628_v53, 0.0  ;;  %v2646_v29 = vmul.f32 %v4381_v48, %v2628_v53 }
 0x416   : > { %v2523_v13 = vpop.f32.mrf.mxu1 }
 0x417   : > { %v2654_v42 = vsel %vm2637_vm0, %v2628_v53, %v2646_v29  ;;  %v2524_v60 = vadd.f32 %v2523_v13, %v2505_v5  ;;  %v1485_v29 = vadd.f32 %v4375_v51, %v4364_v44 }
 0x418   : > { %2662 = vst [vmem:[%s4389_s29] sm:$0xff] %v2654_v42 }
 0x419   : > { %v2614_v45 = vadd.f32 %v2600_v8, %v2524_v60  ;;  %v2540_v55 = vpop.f32.mrf.mxu3 }
 0x41a   : > { %v2541_v19 = vadd.f32 %v2540_v55, %v1507_v20 }
 0x41b   : > { %v2630_v27 = vadd.f32 %v2622_v57, %v2614_v45  ;;  %v1514_v57 = vadd.f32 %v4379_v22, %v1485_v29 }
 0x41c   : > { %v2560_v4 = vadd.f32 %v2559_v49, %v2541_v19 }
 0x41d   : > { %vm2639_vm1 = vcmp.gt.f32.partialorder %v2630_v27, 0.0  ;;  %v2648_v62 = vmul.f32 %v4381_v48, %v2630_v27 }
 0x41e   : > { %v2579_v39 = vadd.f32 %v2578_v17, %v2560_v4  ;;  %v2526_v56 = vpop.f32.mrf.mxu1  ;;  %v2566_v17 = vpop.f32.mrf.mxu2 }
 0x41f   : > { %v2656_v32 = vsel %vm2639_vm1, %v2630_v27, %v2648_v62  ;;  %v2527_v23 = vadd.f32 %v2526_v56, %v2508_v9 }
 0x420   : > { %2664 = vst [vmem:[%s4389_s29 + $0x10] sm:$0xff] %v2656_v32  ;;  %v2613_v54 = vadd.f32 %v2595_v25, %v2579_v39  ;;  %v2623_v25 = vld [vmem:[%s3331_s19 + $0x18] sm:$0xff] }
 0x421   : > { %v2616_v21 = vadd.f32 %v2605_v3, %v2527_v23  ;;  %v2542_v36 = vpop.f32.mrf.mxu3 }
 0x422   : > { %v2629_v58 = vadd.f32 %v2621_v6, %v2613_v54  ;;  %v2543_v37 = vadd.f32 %v2542_v36, %v1509_v41 }
 0x423   : > { %v2632_v43 = vadd.f32 %v2624_v11, %v2616_v21 }
 0x424   : > { %vm2638_vm2 = vcmp.gt.f32.partialorder %v2629_v58, 0.0  ;;  %v2647_v2 = vmul.f32 %v4381_v48, %v2629_v58  ;;  %v2562_v18 = vadd.f32 %v2561_v26, %v2543_v37 }
 0x425   : > { %vm2641_vm3 = vcmp.gt.f32.partialorder %v2632_v43, 0.0  ;;  %v2650_v35 = vmul.f32 %v4381_v48, %v2632_v43 }
 0x426   : > { %v2655_v33 = vsel %vm2638_vm2, %v2629_v58, %v2647_v2  ;;  %v2581_v10 = vadd.f32 %v2580_v40, %v2562_v18  ;;  %v2528_v59 = vpop.f32.mrf.mxu1 }
 0x427   : > { %2663 = vst [vmem:[%s4389_s29 + $0x8] sm:$0xff] %v2655_v33  ;;  %v2658_v14 = vsel %vm2641_vm3, %v2632_v43, %v2650_v35  ;;  %v2529_v61 = vadd.f32 %v2528_v59, %v2510_v34 }
 0x428   : > { %2666 = vst [vmem:[%s4389_s29 + $0x20] sm:$0xff] %v2658_v14  ;;  %v2615_v24 = vadd.f32 %v2600_v8, %v2581_v10 }
 0x429   : > { %v2618_v38 = vadd.f32 %v2610_v46, %v2529_v61  ;;  %v2545_v53 = vpop.f32.mrf.mxu3 }
 0x42a   : > { %v2631_v30 = vadd.f32 %v2623_v25, %v2615_v24  ;;  %v2546_v52 = vadd.f32 %v2545_v53, %v1512_v1 }
 0x42b   : > { %v2634_v5 = vadd.f32 %v2626_v63, %v2618_v38 }
 0x42c   : > { %vm2640_vm4 = vcmp.gt.f32.partialorder %v2631_v30, 0.0  ;;  %v2649_v13 = vmul.f32 %v4381_v48, %v2631_v30  ;;  %v2565_v49 = vadd.f32 %v2564_v47, %v2546_v52 }
 0x42d   : > { %vm2643_vm5 = vcmp.gt.f32.partialorder %v2634_v5, 0.0  ;;  %v2652_v15 = vmul.f32 %v4381_v48, %v2634_v5 }
 0x42e   : > { %v2657_v42 = vsel %vm2640_vm4, %v2631_v30, %v2649_v13  ;;  %v2583_v60 = vpop.f32.mrf.mxu1 }
 0x42f   : > { %2665 = vst [vmem:[%s4389_s29 + $0x18] sm:$0xff] %v2657_v42  ;;  %v2660_v8 = vsel %vm2643_vm5, %v2634_v5, %v2652_v15  ;;  %v2584_v20 = vadd.f32 %v2583_v60, %v2565_v49 }
 0x430   : > { %2668 = vst [vmem:[%s4389_s29 + $0x30] sm:$0xff] %v2660_v8 }
 0x431   : > { %v2617_v45 = vadd.f32 %v2605_v3, %v2584_v20  ;;  %v2547_v44 = vpop.f32.mrf.mxu3 }
 0x432   : > { %v2548_v51 = vadd.f32 %v2547_v44, %v1514_v57 }
 0x433   : > { %v2633_v55 = vadd.f32 %v2625_v31, %v2617_v45 }
 0x434   : > { %v2567_v0 = vadd.f32 %v2566_v17, %v2548_v51 }
 0x435   : > { %vm2642_vm6 = vcmp.gt.f32.partialorder %v2633_v55, 0.0  ;;  %v2651_v19 = vmul.f32 %v4381_v48, %v2633_v55 }
 0x436   : > { %v2585_v27 = vpop.f32.mrf.mxu1 }
 0x437   : > { %v2659_v12 = vsel %vm2642_vm6, %v2633_v55, %v2651_v19  ;;  %v2586_v4 = vadd.f32 %v2585_v27, %v2567_v0 }
 0x438   : > { %2667 = vst [vmem:[%s4389_s29 + $0x28] sm:$0xff] %v2659_v12 }
 0x439   : > { %v2619_v9 = vadd.f32 %v2610_v46, %v2586_v4 }
 0x43b   : > { %v2635_v62 = vadd.f32 %v2627_v16, %v2619_v9 }
 0x43d   : > { %vm2644_vm7 = vcmp.gt.f32.partialorder %v2635_v62, 0.0  ;;  %v2653_v22 = vmul.f32 %v4381_v48, %v2635_v62 }
 0x43f   : > { %v2661_v39 = vsel %vm2644_vm7, %v2635_v62, %v2653_v22 }
 0x440   : > { %2669 = vst [vmem:[%s4389_s29 + $0x38] sm:$0xff] %v2661_v39 }
 0x441 PF: > { %s20_s9 = sadd.s32 1, %s3231_s9  }
 0x442   : > { %p17_p4 = scmp.ge.s32.totalorder %s20_s9, 4  }
 0x444   :  { %19 = sbr.rel (!%p17_p4) target bundleno = 3 (0x3), region = 83 }

</bundles_post_ra>
